<compile_context>
chip_gen: v7x
topology: tpu7x:2x2x1
jax: 0.10.0
libtpu: 0.0.40
codegen_flags: <defaults>
</compile_context>

<pallas_src>
import functools

import numpy as np

import jax
import jax.numpy as jnp
from jax.experimental import pallas as pl
from jax.experimental.pallas import tpu as pltpu


# ----------------------------------------------------------------------------
# Config + deterministic synthetic parameters (kept in PyTorch layouts).
# ----------------------------------------------------------------------------
class AEConfig:
    lv = 1
    in_ch = 4
    out_ch = 8
    f_size = 3


def init_ae_params(cfg, key):
    def uinit(key, shape, fan_in):
        bound = 1.0 / jnp.sqrt(jnp.float32(fan_in))
        return jax.random.uniform(key, shape, jnp.float32, -bound, bound)

    ks = jax.random.split(key, 8)
    c_in, c_out, f = cfg.in_ch, cfg.out_ch, cfg.f_size
    return {
        # encoder: Conv2d(in_ch, out_ch*4, 3, s=2, p=1) -> ReLU
        "enc1_w": uinit(ks[0], (c_out * 4, c_in, 3, 3), c_in * 9),
        "enc1_b": uinit(ks[1], (c_out * 4,), c_in * 9),
        #          Conv2d(out_ch*4, out_ch, 3, s=2, p=1) -> ReLU
        "enc2_w": uinit(ks[2], (c_out, c_out * 4, 3, 3), c_out * 4 * 9),
        "enc2_b": uinit(ks[3], (c_out,), c_out * 4 * 9),
        # decoder: ConvTranspose2d(out_ch, out_ch, f+1, s=2, p=1) -> ReLU
        "dec1_w": uinit(ks[4], (c_out, c_out, f + 1, f + 1), c_out * (f + 1) ** 2),
        "dec1_b": uinit(ks[5], (c_out,), c_out * (f + 1) ** 2),
        #          ConvTranspose2d(out_ch, in_ch, f+1, s=2, p=1) -> Tanh
        "dec2_w": uinit(ks[6], (c_out, c_in, f + 1, f + 1), c_in * (f + 1) ** 2),
        "dec2_b": uinit(ks[7], (c_in,), c_in * (f + 1) ** 2),
    }
    # TODO(synk): torch.optim.Adam in __init__ is training-only state; no
    # forward-pass equivalent is needed.


# ----------------------------------------------------------------------------
# Host-side (one-time) fold of Conv2d / ConvTranspose2d into matmul operands.
# ----------------------------------------------------------------------------
def _layer_mats(w, b, h_in, w_in, stride, pad, transpose, row_pack=1):
    """Build per-image ry[dy] (out_rows, h_in), the tap-stacked Mcat
    (kh*w_in*c_in, n_cols) and bias_row so that the layer is
        act( bias + concat_dy(ry[dy] @ A) @ Mcat )
    with A[iy, ix*C_in + ci] the incoming per-image activation matrix.
    `row_pack` packs that many consecutive output image rows into one matrix
    row (columns ordered [row-parity, ox, co])."""
    w = np.asarray(w, np.float32)
    b = np.asarray(b, np.float32)
    if transpose:
        c_in, c_out, kh, kw = w.shape
        h_out = (h_in - 1) * stride - 2 * pad + kh
        w_out = (w_in - 1) * stride - 2 * pad + kw
    else:
        c_out, c_in, kh, kw = w.shape
        h_out = (h_in + 2 * pad - kh) // stride + 1
        w_out = (w_in + 2 * pad - kw) // stride + 1
    assert row_pack == 1 or (transpose and stride % row_pack == 0)
    assert h_out % row_pack == 0
    out_rows = h_out // row_pack
    n_cols = row_pack * w_out * c_out

    ry = np.zeros((kh, out_rows, h_in), np.float32)
    m = np.zeros((kh, w_in * c_in, n_cols), np.float32)
    for dy in range(kh):
        if transpose:
            # output row oy = stride*iy - pad + dy  (scatter form, no flips)
            for iy in range(h_in):
                oy = stride * iy - pad + dy
                if 0 <= oy < h_out:
                    ry[dy, oy // row_pack, iy] = 1.0
            par = (dy - pad) % row_pack if row_pack > 1 else 0
        else:
            # input row iy = stride*oy - pad + dy
            for oy in range(h_out):
                iy = stride * oy - pad + dy
                if 0 <= iy < h_in:
                    ry[dy, oy, iy] = 1.0
            par = 0
        col0 = par * w_out * c_out
        for dx in range(kw):
            blk = w[:, :, dy, dx] if transpose else w[:, :, dy, dx].T  # (Cin,Cout)
            if transpose:
                pairs = [(ix, stride * ix - pad + dx) for ix in range(w_in)]
            else:
                pairs = [(stride * ox - pad + dx, ox) for ox in range(w_out)]
            for ix, ox in pairs:
                if 0 <= ix < w_in and 0 <= ox < w_out:
                    m[dy,
                      ix * c_in:(ix + 1) * c_in,
                      col0 + ox * c_out:col0 + (ox + 1) * c_out] += blk

    mcat = m.reshape(kh * w_in * c_in, n_cols)   # taps stacked along contraction
    bias_row = np.tile(b, row_pack * w_out).reshape(1, n_cols)
    return ry, mcat, bias_row, (h_out, w_out, c_out, out_rows)


_PARAM_ORDER = ("ry1", "m1", "b1", "ry2", "m2", "b2",
                "ry3", "m3", "b3", "ry4", "m4", "b4")


def pick_tile_batch(batch, target=32):
    """Largest divisor of `batch` that is <= target (target=32 -> 256-row
    matmul tiles for the 256x256 MXU on v6e/v7x; use 16 on v5e)."""
    tb = min(batch, target)
    while batch % tb:
        tb -= 1
    return max(tb, 1)


def prepare_matmul_params(params, cfg, height, width, tb):
    """One-time host-side fold of the PyTorch conv weights into matmul form,
    with the row-selection matrices built block-diagonally over the TB images
    processed per grid step (Mcat and bias stay shared across the batch)."""
    p = {k: np.asarray(v, np.float32) for k, v in params.items()}
    out = {}
    h, w = height, width
    eye = np.eye(tb, dtype=np.float32)
    layers = [("1", "enc1", False, 1), ("2", "enc2", False, 1),
              ("3", "dec1", True, 1), ("4", "dec2", True, 2)]
    for tag, name, transpose, pack in layers:
        ry, mcat, br, (h, w, _c, out_rows) = _layer_mats(
            p[name + "_w"], p[name + "_b"], h, w,
            stride=2, pad=1, transpose=transpose, row_pack=pack)
        ry_blk = np.stack([np.kron(eye, ry[d]) for d in range(ry.shape[0])])
        out["ry" + tag] = jnp.asarray(ry_blk)     # (kh, tb*out_rows, tb*in_rows)
        out["m" + tag] = jnp.asarray(mcat)        # (kh*w_in*c_in, n_cols)
        out["b" + tag] = jnp.asarray(br)          # (1, n_cols)
    # the packed kernel output must hold exactly the full output image
    per_img_rows = out["ry4"].shape[1] // tb
    assert per_img_rows * out["m4"].shape[1] == height * width * cfg.in_ch
    return out


# ----------------------------------------------------------------------------
# The fused Pallas kernel: whole network forward for one block of TB images.
# ----------------------------------------------------------------------------
def _ae_fused_kernel(x_ref,
                     ry1_ref, m1_ref, b1_ref,
                     ry2_ref, m2_ref, b2_ref,
                     ry3_ref, m3_ref, b3_ref,
                     ry4_ref, m4_ref, b4_ref,
                     o_ref):
    def layer(a, ry_ref, m_ref, b_ref, act):
        # kh row-selection matmuls (block-diag over the TB images), one
        # lane-axis concat, then a single deep-contraction matmul with the
        # host-prestacked Mcat.  Bias + activation fused in one VPU/EUP pass.
        taps = [jnp.dot(ry_ref[d], a, preferred_element_type=jnp.float32)
                for d in range(ry_ref.shape[0])]
        t = jnp.concatenate(taps, axis=1)
        z = jnp.dot(t, m_ref[...], preferred_element_type=jnp.float32) + b_ref[...]
        if act == "relu":
            return jnp.maximum(z, 0.0)
        return jnp.tanh(z)

    a = x_ref[...]                                 # (TB*16, 64)  = (rows, W*Cin)
    a = layer(a, ry1_ref, m1_ref, b1_ref, "relu")  # (TB*8, 256)
    a = layer(a, ry2_ref, m2_ref, b2_ref, "relu")  # (TB*4, 32)
    a = layer(a, ry3_ref, m3_ref, b3_ref, "relu")  # (TB*8, 64)
    a = layer(a, ry4_ref, m4_ref, b4_ref, "tanh")  # (TB*8, 128) 2 image rows/row
    o_ref[...] = a


def ae_forward_nhwc(prep, x_nhwc, tb):
    """NHWC in -> NHWC out; one fused pallas_call, zero wrapper layout passes
    (both reshapes below are free row-major reshapes)."""
    B, H, W, C = x_nhwc.shape
    assert B % tb == 0
    x2d = x_nhwc.astype(jnp.float32).reshape(B * H, W * C)       # (B*16, 64)

    rows_step = prep["ry4"].shape[1]                              # TB*8
    cols_out = prep["m4"].shape[1]                                # 128
    ordered = [prep[k] for k in _PARAM_ORDER]

    def const_spec(arr):
        zeros = (0,) * arr.ndim
        return pl.BlockSpec(arr.shape, lambda b, z=zeros: z)

    out_packed = pl.pallas_call(
        _ae_fused_kernel,
        out_shape=jax.ShapeDtypeStruct(((B // tb) * rows_step, cols_out),
                                       jnp.float32),
        grid=(B // tb,),                           # one TB-image block per step
        in_specs=[pl.BlockSpec((tb * H, W * C), lambda b: (b, 0))]
                 + [const_spec(a) for a in ordered],
        out_specs=pl.BlockSpec((rows_step, cols_out), lambda b: (b, 0)),
        compiler_params=pltpu.CompilerParams(
            dimension_semantics=("parallel",),     # v7x: batch blocks on both TCs
        ),
    )(x2d, *ordered)

    # (B*8, 128): each row packs 2 image rows, cols = [row-parity, ox, co];
    # a plain (free) reshape is exactly NHWC.
    return out_packed.reshape(B, H, W, C)


def ae_forward(prep, x_nchw, tb):
    """Thin NCHW adapter around the NHWC core, matching the PyTorch module."""
    x = jnp.transpose(x_nchw, (0, 2, 3, 1))
    y = ae_forward_nhwc(prep, x, tb)
    return jnp.transpose(y, (0, 3, 1, 2))


# ----------------------------------------------------------------------------
# Plain-XLA reference of the same PyTorch module (validation only).
# ----------------------------------------------------------------------------
def reference_forward(params, x_nchw):
    dn = ("NHWC", "HWIO", "NHWC")
    hi = jax.lax.Precision.HIGHEST

    def conv(x, w, b, s, p):
        w_hwio = jnp.transpose(w, (2, 3, 1, 0))
        y = jax.lax.conv_general_dilated(x, w_hwio, (s, s), ((p, p), (p, p)),
                                         dimension_numbers=dn, precision=hi)
        return y + b.reshape(1, 1, 1, -1)

    def tconv(x, w, b, s, p):
        k = w.shape[2]
        w_hwio = jnp.transpose(w[:, :, ::-1, ::-1], (2, 3, 0, 1))
        y = jax.lax.conv_general_dilated(x, w_hwio, (1, 1),
                                         ((k - 1 - p, k - 1 - p),) * 2,
                                         lhs_dilation=(s, s),
                                         dimension_numbers=dn, precision=hi)
        return y + b.reshape(1, 1, 1, -1)

    x = jnp.transpose(x_nchw, (0, 2, 3, 1)).astype(jnp.float32)
    h = jax.nn.relu(conv(x, params["enc1_w"], params["enc1_b"], 2, 1))
    h = jax.nn.relu(conv(h, params["enc2_w"], params["enc2_b"], 2, 1))
    y = jax.nn.relu(tconv(h, params["dec1_w"], params["dec1_b"], 2, 1))
    y = jnp.tanh(tconv(y, params["dec2_w"], params["dec2_b"], 2, 1))
    return jnp.transpose(y, (0, 3, 1, 2))


if __name__ == "__main__":
    cfg = AEConfig()
    key = jax.random.PRNGKey(0)
    pkey, xkey = jax.random.split(key)
    params = init_ae_params(cfg, pkey)

    # small NCHW input consistent with the module: (B=2, C=in_ch, 16, 16)
    B, H, W = 2, 16, 16
    x = jax.random.normal(xkey, (B, cfg.in_ch, H, W), jnp.float32)

    # TB images per grid step (32 -> 256-row MXU tiles on v6e/v7x; 16 on v5e).
    TB = pick_tile_batch(B, target=32)
    prep = prepare_matmul_params(params, cfg, height=H, width=W, tb=TB)

    fwd = jax.jit(functools.partial(ae_forward, tb=TB))
    out = jax.block_until_ready(fwd(prep, x))

    assert out.shape == (B, cfg.in_ch, H, W), out.shape
    assert out.dtype == jnp.float32
    assert bool(jnp.all(jnp.isfinite(out)))
    assert bool(jnp.all(jnp.abs(out) <= 1.0))          # tanh output range

    # validate against a plain-XLA reference of the PyTorch module
    ref = jax.block_until_ready(jax.jit(reference_forward)(params, x))
    err = float(jnp.max(jnp.abs(out - ref)))
    scale = float(jnp.max(jnp.abs(ref)))
    assert err <= 0.05 * scale + 1e-4, (err, scale)

    print("KERNEL_OK")
</pallas_src>

<mosaic_0001>
module attributes {stable_mosaic.version = 11 : i64} {
  func.func @_ae_fused_kernel(%arg0: i32, %arg1: memref<32x64xf32, #tpu.memory_space<vmem>>, %arg2: memref<3x16x32xf32, #tpu.memory_space<vmem>>, %arg3: memref<192x256xf32, #tpu.memory_space<vmem>>, %arg4: memref<1x256xf32, #tpu.memory_space<vmem>>, %arg5: memref<3x8x16xf32, #tpu.memory_space<vmem>>, %arg6: memref<768x32xf32, #tpu.memory_space<vmem>>, %arg7: memref<1x32xf32, #tpu.memory_space<vmem>>, %arg8: memref<4x16x8xf32, #tpu.memory_space<vmem>>, %arg9: memref<128x64xf32, #tpu.memory_space<vmem>>, %arg10: memref<1x64xf32, #tpu.memory_space<vmem>>, %arg11: memref<4x16x16xf32, #tpu.memory_space<vmem>>, %arg12: memref<256x128xf32, #tpu.memory_space<vmem>>, %arg13: memref<1x128xf32, #tpu.memory_space<vmem>>, %arg14: memref<16x128xf32, #tpu.memory_space<vmem>>) attributes {dimension_semantics = [#tpu.dimension_semantics<parallel>], iteration_bounds = array<i64: 1>, scalar_prefetch = 0 : i64, scratch_operands = 0 : i64, tpu.core_type = #tpu.core_type<tc>, window_params = [{transform_indices = @transform_0, window_bounds = array<i64: 32, 64>}, {pipeline_mode = #tpu.pipeline_mode<synchronous>, transform_indices = @transform_1, window_bounds = array<i64: 3, 16, 32>}, {pipeline_mode = #tpu.pipeline_mode<synchronous>, transform_indices = @transform_2, window_bounds = array<i64: 192, 256>}, {pipeline_mode = #tpu.pipeline_mode<synchronous>, transform_indices = @transform_3, window_bounds = array<i64: 1, 256>}, {pipeline_mode = #tpu.pipeline_mode<synchronous>, transform_indices = @transform_4, window_bounds = array<i64: 3, 8, 16>}, {pipeline_mode = #tpu.pipeline_mode<synchronous>, transform_indices = @transform_5, window_bounds = array<i64: 768, 32>}, {pipeline_mode = #tpu.pipeline_mode<synchronous>, transform_indices = @transform_6, window_bounds = array<i64: 1, 32>}, {pipeline_mode = #tpu.pipeline_mode<synchronous>, transform_indices = @transform_7, window_bounds = array<i64: 4, 16, 8>}, {pipeline_mode = #tpu.pipeline_mode<synchronous>, transform_indices = @transform_8, window_bounds = array<i64: 128, 64>}, {pipeline_mode = #tpu.pipeline_mode<synchronous>, transform_indices = @transform_9, window_bounds = array<i64: 1, 64>}, {pipeline_mode = #tpu.pipeline_mode<synchronous>, transform_indices = @transform_10, window_bounds = array<i64: 4, 16, 16>}, {pipeline_mode = #tpu.pipeline_mode<synchronous>, transform_indices = @transform_11, window_bounds = array<i64: 256, 128>}, {pipeline_mode = #tpu.pipeline_mode<synchronous>, transform_indices = @transform_12, window_bounds = array<i64: 1, 128>}, {transform_indices = @transform_13, window_bounds = array<i64: 16, 128>}]} {
    %c0 = arith.constant 0 : index
    %c0_0 = arith.constant 0 : index
    %0 = vector.load %arg1[%c0, %c0_0] : memref<32x64xf32, #tpu.memory_space<vmem>>, vector<32x64xf32>
    %c0_1 = arith.constant 0 : index
    %c0_2 = arith.constant 0 : index
    %c0_3 = arith.constant 0 : index
    %1 = vector.load %arg2[%c0_1, %c0_2, %c0_3] : memref<3x16x32xf32, #tpu.memory_space<vmem>>, vector<1x16x32xf32>
    %2 = vector.shape_cast %1 : vector<1x16x32xf32> to vector<16x32xf32>
    %cst = arith.constant dense<0.000000e+00> : vector<16x64xf32>
    %3 = tpu.matmul %2, %0, %cst {dimension_numbers = #tpu.dot_dimension_numbers<[1], [0], [0], [1], [0, 0, 1, 1], [], []>} : vector<16x32xf32>, vector<32x64xf32>, vector<16x64xf32> -> vector<16x64xf32>
    %c1 = arith.constant 1 : index
    %c0_4 = arith.constant 0 : index
    %c0_5 = arith.constant 0 : index
    %4 = vector.load %arg2[%c1, %c0_4, %c0_5] : memref<3x16x32xf32, #tpu.memory_space<vmem>>, vector<1x16x32xf32>
    %5 = vector.shape_cast %4 : vector<1x16x32xf32> to vector<16x32xf32>
    %cst_6 = arith.constant dense<0.000000e+00> : vector<16x64xf32>
    %6 = tpu.matmul %5, %0, %cst_6 {dimension_numbers = #tpu.dot_dimension_numbers<[1], [0], [0], [1], [0, 0, 1, 1], [], []>} : vector<16x32xf32>, vector<32x64xf32>, vector<16x64xf32> -> vector<16x64xf32>
    %c2 = arith.constant 2 : index
    %c0_7 = arith.constant 0 : index
    %c0_8 = arith.constant 0 : index
    %7 = vector.load %arg2[%c2, %c0_7, %c0_8] : memref<3x16x32xf32, #tpu.memory_space<vmem>>, vector<1x16x32xf32>
    %8 = vector.shape_cast %7 : vector<1x16x32xf32> to vector<16x32xf32>
    %cst_9 = arith.constant dense<0.000000e+00> : vector<16x64xf32>
    %9 = tpu.matmul %8, %0, %cst_9 {dimension_numbers = #tpu.dot_dimension_numbers<[1], [0], [0], [1], [0, 0, 1, 1], [], []>} : vector<16x32xf32>, vector<32x64xf32>, vector<16x64xf32> -> vector<16x64xf32>
    %10 = tpu.concatenate %3, %6, %9 in 1 : vector<16x64xf32>, vector<16x64xf32>, vector<16x64xf32> -> vector<16x192xf32>
    %c0_10 = arith.constant 0 : index
    %c0_11 = arith.constant 0 : index
    %11 = vector.load %arg3[%c0_10, %c0_11] : memref<192x256xf32, #tpu.memory_space<vmem>>, vector<192x256xf32>
    %cst_12 = arith.constant dense<0.000000e+00> : vector<16x256xf32>
    %12 = tpu.matmul %10, %11, %cst_12 {dimension_numbers = #tpu.dot_dimension_numbers<[1], [0], [0], [1], [0, 0, 1, 1], [], []>} : vector<16x192xf32>, vector<192x256xf32>, vector<16x256xf32> -> vector<16x256xf32>
    %c0_13 = arith.constant 0 : index
    %c0_14 = arith.constant 0 : index
    %13 = vector.load %arg4[%c0_13, %c0_14] : memref<1x256xf32, #tpu.memory_space<vmem>>, vector<1x256xf32>
    %14 = vector.broadcast %13 : vector<1x256xf32> to vector<16x256xf32>
    %15 = arith.addf %12, %14 : vector<16x256xf32>
    %cst_15 = arith.constant 0.000000e+00 : f32
    %16 = vector.broadcast %cst_15 : f32 to vector<16x256xf32>
    %17 = arith.maximumf %15, %16 : vector<16x256xf32>
    %c0_16 = arith.constant 0 : index
    %c0_17 = arith.constant 0 : index
    %c0_18 = arith.constant 0 : index
    %18 = vector.load %arg5[%c0_16, %c0_17, %c0_18] : memref<3x8x16xf32, #tpu.memory_space<vmem>>, vector<1x8x16xf32>
    %19 = vector.shape_cast %18 : vector<1x8x16xf32> to vector<8x16xf32>
    %cst_19 = arith.constant dense<0.000000e+00> : vector<8x256xf32>
    %20 = tpu.matmul %19, %17, %cst_19 {dimension_numbers = #tpu.dot_dimension_numbers<[1], [0], [0], [1], [0, 0, 1, 1], [], []>} : vector<8x16xf32>, vector<16x256xf32>, vector<8x256xf32> -> vector<8x256xf32>
    %c1_20 = arith.constant 1 : index
    %c0_21 = arith.constant 0 : index
    %c0_22 = arith.constant 0 : index
    %21 = vector.load %arg5[%c1_20, %c0_21, %c0_22] : memref<3x8x16xf32, #tpu.memory_space<vmem>>, vector<1x8x16xf32>
    %22 = vector.shape_cast %21 : vector<1x8x16xf32> to vector<8x16xf32>
    %cst_23 = arith.constant dense<0.000000e+00> : vector<8x256xf32>
    %23 = tpu.matmul %22, %17, %cst_23 {dimension_numbers = #tpu.dot_dimension_numbers<[1], [0], [0], [1], [0, 0, 1, 1], [], []>} : vector<8x16xf32>, vector<16x256xf32>, vector<8x256xf32> -> vector<8x256xf32>
    %c2_24 = arith.constant 2 : index
    %c0_25 = arith.constant 0 : index
    %c0_26 = arith.constant 0 : index
    %24 = vector.load %arg5[%c2_24, %c0_25, %c0_26] : memref<3x8x16xf32, #tpu.memory_space<vmem>>, vector<1x8x16xf32>
    %25 = vector.shape_cast %24 : vector<1x8x16xf32> to vector<8x16xf32>
    %cst_27 = arith.constant dense<0.000000e+00> : vector<8x256xf32>
    %26 = tpu.matmul %25, %17, %cst_27 {dimension_numbers = #tpu.dot_dimension_numbers<[1], [0], [0], [1], [0, 0, 1, 1], [], []>} : vector<8x16xf32>, vector<16x256xf32>, vector<8x256xf32> -> vector<8x256xf32>
    %27 = tpu.concatenate %20, %23, %26 in 1 : vector<8x256xf32>, vector<8x256xf32>, vector<8x256xf32> -> vector<8x768xf32>
    %c0_28 = arith.constant 0 : index
    %c0_29 = arith.constant 0 : index
    %28 = vector.load %arg6[%c0_28, %c0_29] : memref<768x32xf32, #tpu.memory_space<vmem>>, vector<768x32xf32>
    %cst_30 = arith.constant dense<0.000000e+00> : vector<8x32xf32>
    %29 = tpu.matmul %27, %28, %cst_30 {dimension_numbers = #tpu.dot_dimension_numbers<[1], [0], [0], [1], [0, 0, 1, 1], [], []>} : vector<8x768xf32>, vector<768x32xf32>, vector<8x32xf32> -> vector<8x32xf32>
    %c0_31 = arith.constant 0 : index
    %c0_32 = arith.constant 0 : index
    %30 = vector.load %arg7[%c0_31, %c0_32] : memref<1x32xf32, #tpu.memory_space<vmem>>, vector<1x32xf32>
    %31 = vector.broadcast %30 : vector<1x32xf32> to vector<8x32xf32>
    %32 = arith.addf %29, %31 : vector<8x32xf32>
    %cst_33 = arith.constant 0.000000e+00 : f32
    %33 = vector.broadcast %cst_33 : f32 to vector<8x32xf32>
    %34 = arith.maximumf %32, %33 : vector<8x32xf32>
    %c0_34 = arith.constant 0 : index
    %c0_35 = arith.constant 0 : index
    %c0_36 = arith.constant 0 : index
    %35 = vector.load %arg8[%c0_34, %c0_35, %c0_36] : memref<4x16x8xf32, #tpu.memory_space<vmem>>, vector<1x16x8xf32>
    %36 = vector.shape_cast %35 : vector<1x16x8xf32> to vector<16x8xf32>
    %cst_37 = arith.constant dense<0.000000e+00> : vector<16x32xf32>
    %37 = tpu.matmul %36, %34, %cst_37 {dimension_numbers = #tpu.dot_dimension_numbers<[1], [0], [0], [1], [0, 0, 1, 1], [], []>} : vector<16x8xf32>, vector<8x32xf32>, vector<16x32xf32> -> vector<16x32xf32>
    %c1_38 = arith.constant 1 : index
    %c0_39 = arith.constant 0 : index
    %c0_40 = arith.constant 0 : index
    %38 = vector.load %arg8[%c1_38, %c0_39, %c0_40] : memref<4x16x8xf32, #tpu.memory_space<vmem>>, vector<1x16x8xf32>
    %39 = vector.shape_cast %38 : vector<1x16x8xf32> to vector<16x8xf32>
    %cst_41 = arith.constant dense<0.000000e+00> : vector<16x32xf32>
    %40 = tpu.matmul %39, %34, %cst_41 {dimension_numbers = #tpu.dot_dimension_numbers<[1], [0], [0], [1], [0, 0, 1, 1], [], []>} : vector<16x8xf32>, vector<8x32xf32>, vector<16x32xf32> -> vector<16x32xf32>
    %c2_42 = arith.constant 2 : index
    %c0_43 = arith.constant 0 : index
    %c0_44 = arith.constant 0 : index
    %41 = vector.load %arg8[%c2_42, %c0_43, %c0_44] : memref<4x16x8xf32, #tpu.memory_space<vmem>>, vector<1x16x8xf32>
    %42 = vector.shape_cast %41 : vector<1x16x8xf32> to vector<16x8xf32>
    %cst_45 = arith.constant dense<0.000000e+00> : vector<16x32xf32>
    %43 = tpu.matmul %42, %34, %cst_45 {dimension_numbers = #tpu.dot_dimension_numbers<[1], [0], [0], [1], [0, 0, 1, 1], [], []>} : vector<16x8xf32>, vector<8x32xf32>, vector<16x32xf32> -> vector<16x32xf32>
    %c3 = arith.constant 3 : index
    %c0_46 = arith.constant 0 : index
    %c0_47 = arith.constant 0 : index
    %44 = vector.load %arg8[%c3, %c0_46, %c0_47] : memref<4x16x8xf32, #tpu.memory_space<vmem>>, vector<1x16x8xf32>
    %45 = vector.shape_cast %44 : vector<1x16x8xf32> to vector<16x8xf32>
    %cst_48 = arith.constant dense<0.000000e+00> : vector<16x32xf32>
    %46 = tpu.matmul %45, %34, %cst_48 {dimension_numbers = #tpu.dot_dimension_numbers<[1], [0], [0], [1], [0, 0, 1, 1], [], []>} : vector<16x8xf32>, vector<8x32xf32>, vector<16x32xf32> -> vector<16x32xf32>
    %47 = tpu.concatenate %37, %40, %43, %46 in 1 : vector<16x32xf32>, vector<16x32xf32>, vector<16x32xf32>, vector<16x32xf32> -> vector<16x128xf32>
    %c0_49 = arith.constant 0 : index
    %c0_50 = arith.constant 0 : index
    %48 = vector.load %arg9[%c0_49, %c0_50] : memref<128x64xf32, #tpu.memory_space<vmem>>, vector<128x64xf32>
    %cst_51 = arith.constant dense<0.000000e+00> : vector<16x64xf32>
    %49 = tpu.matmul %47, %48, %cst_51 {dimension_numbers = #tpu.dot_dimension_numbers<[1], [0], [0], [1], [0, 0, 1, 1], [], []>} : vector<16x128xf32>, vector<128x64xf32>, vector<16x64xf32> -> vector<16x64xf32>
    %c0_52 = arith.constant 0 : index
    %c0_53 = arith.constant 0 : index
    %50 = vector.load %arg10[%c0_52, %c0_53] : memref<1x64xf32, #tpu.memory_space<vmem>>, vector<1x64xf32>
    %51 = vector.broadcast %50 : vector<1x64xf32> to vector<16x64xf32>
    %52 = arith.addf %49, %51 : vector<16x64xf32>
    %cst_54 = arith.constant 0.000000e+00 : f32
    %53 = vector.broadcast %cst_54 : f32 to vector<16x64xf32>
    %54 = arith.maximumf %52, %53 : vector<16x64xf32>
    %c0_55 = arith.constant 0 : index
    %c0_56 = arith.constant 0 : index
    %c0_57 = arith.constant 0 : index
    %55 = vector.load %arg11[%c0_55, %c0_56, %c0_57] : memref<4x16x16xf32, #tpu.memory_space<vmem>>, vector<1x16x16xf32>
    %56 = vector.shape_cast %55 : vector<1x16x16xf32> to vector<16x16xf32>
    %cst_58 = arith.constant dense<0.000000e+00> : vector<16x64xf32>
    %57 = tpu.matmul %56, %54, %cst_58 {dimension_numbers = #tpu.dot_dimension_numbers<[1], [0], [0], [1], [0, 0, 1, 1], [], []>} : vector<16x16xf32>, vector<16x64xf32>, vector<16x64xf32> -> vector<16x64xf32>
    %c1_59 = arith.constant 1 : index
    %c0_60 = arith.constant 0 : index
    %c0_61 = arith.constant 0 : index
    %58 = vector.load %arg11[%c1_59, %c0_60, %c0_61] : memref<4x16x16xf32, #tpu.memory_space<vmem>>, vector<1x16x16xf32>
    %59 = vector.shape_cast %58 : vector<1x16x16xf32> to vector<16x16xf32>
    %cst_62 = arith.constant dense<0.000000e+00> : vector<16x64xf32>
    %60 = tpu.matmul %59, %54, %cst_62 {dimension_numbers = #tpu.dot_dimension_numbers<[1], [0], [0], [1], [0, 0, 1, 1], [], []>} : vector<16x16xf32>, vector<16x64xf32>, vector<16x64xf32> -> vector<16x64xf32>
    %c2_63 = arith.constant 2 : index
    %c0_64 = arith.constant 0 : index
    %c0_65 = arith.constant 0 : index
    %61 = vector.load %arg11[%c2_63, %c0_64, %c0_65] : memref<4x16x16xf32, #tpu.memory_space<vmem>>, vector<1x16x16xf32>
    %62 = vector.shape_cast %61 : vector<1x16x16xf32> to vector<16x16xf32>
    %cst_66 = arith.constant dense<0.000000e+00> : vector<16x64xf32>
    %63 = tpu.matmul %62, %54, %cst_66 {dimension_numbers = #tpu.dot_dimension_numbers<[1], [0], [0], [1], [0, 0, 1, 1], [], []>} : vector<16x16xf32>, vector<16x64xf32>, vector<16x64xf32> -> vector<16x64xf32>
    %c3_67 = arith.constant 3 : index
    %c0_68 = arith.constant 0 : index
    %c0_69 = arith.constant 0 : index
    %64 = vector.load %arg11[%c3_67, %c0_68, %c0_69] : memref<4x16x16xf32, #tpu.memory_space<vmem>>, vector<1x16x16xf32>
    %65 = vector.shape_cast %64 : vector<1x16x16xf32> to vector<16x16xf32>
    %cst_70 = arith.constant dense<0.000000e+00> : vector<16x64xf32>
    %66 = tpu.matmul %65, %54, %cst_70 {dimension_numbers = #tpu.dot_dimension_numbers<[1], [0], [0], [1], [0, 0, 1, 1], [], []>} : vector<16x16xf32>, vector<16x64xf32>, vector<16x64xf32> -> vector<16x64xf32>
    %67 = tpu.concatenate %57, %60, %63, %66 in 1 : vector<16x64xf32>, vector<16x64xf32>, vector<16x64xf32>, vector<16x64xf32> -> vector<16x256xf32>
    %c0_71 = arith.constant 0 : index
    %c0_72 = arith.constant 0 : index
    %68 = vector.load %arg12[%c0_71, %c0_72] : memref<256x128xf32, #tpu.memory_space<vmem>>, vector<256x128xf32>
    %cst_73 = arith.constant dense<0.000000e+00> : vector<16x128xf32>
    %69 = tpu.matmul %67, %68, %cst_73 {dimension_numbers = #tpu.dot_dimension_numbers<[1], [0], [0], [1], [0, 0, 1, 1], [], []>} : vector<16x256xf32>, vector<256x128xf32>, vector<16x128xf32> -> vector<16x128xf32>
    %c0_74 = arith.constant 0 : index
    %c0_75 = arith.constant 0 : index
    %70 = vector.load %arg13[%c0_74, %c0_75] : memref<1x128xf32, #tpu.memory_space<vmem>>, vector<1x128xf32>
    %71 = vector.broadcast %70 : vector<1x128xf32> to vector<16x128xf32>
    %72 = arith.addf %69, %71 : vector<16x128xf32>
    %73 = math.tanh %72 : vector<16x128xf32>
    %c0_76 = arith.constant 0 : index
    %c0_77 = arith.constant 0 : index
    %74 = vector.load %arg14[%c0_76, %c0_77] : memref<16x128xf32, #tpu.memory_space<vmem>>, vector<16x128xf32>
    tpu.vector_store %arg14[%c0_76, %c0_77], %73 {strides = array<i32>} : memref<16x128xf32, #tpu.memory_space<vmem>>, vector<16x128xf32>,
    return
  }
  func.func @transform_0(%arg0: i32) -> (i32, i32) {
    %c0_i32 = arith.constant 0 : i32
    %c0_i32_0 = arith.constant 0 : i32
    return %arg0, %c0_i32 : i32, i32
  }
  func.func @transform_1(%arg0: i32) -> (i32, i32, i32) {
    %c0_i32 = arith.constant 0 : i32
    %c0_i32_0 = arith.constant 0 : i32
    %c0_i32_1 = arith.constant 0 : i32
    %c0_i32_2 = arith.constant 0 : i32
    return %c0_i32, %c0_i32_0, %c0_i32_1 : i32, i32, i32
  }
  func.func @transform_2(%arg0: i32) -> (i32, i32) {
    %c0_i32 = arith.constant 0 : i32
    %c0_i32_0 = arith.constant 0 : i32
    %c0_i32_1 = arith.constant 0 : i32
    return %c0_i32, %c0_i32_0 : i32, i32
  }
  func.func @transform_3(%arg0: i32) -> (i32, i32) {
    %c0_i32 = arith.constant 0 : i32
    %c0_i32_0 = arith.constant 0 : i32
    %c0_i32_1 = arith.constant 0 : i32
    return %c0_i32, %c0_i32_0 : i32, i32
  }
  func.func @transform_4(%arg0: i32) -> (i32, i32, i32) {
    %c0_i32 = arith.constant 0 : i32
    %c0_i32_0 = arith.constant 0 : i32
    %c0_i32_1 = arith.constant 0 : i32
    %c0_i32_2 = arith.constant 0 : i32
    return %c0_i32, %c0_i32_0, %c0_i32_1 : i32, i32, i32
  }
  func.func @transform_5(%arg0: i32) -> (i32, i32) {
    %c0_i32 = arith.constant 0 : i32
    %c0_i32_0 = arith.constant 0 : i32
    %c0_i32_1 = arith.constant 0 : i32
    return %c0_i32, %c0_i32_0 : i32, i32
  }
  func.func @transform_6(%arg0: i32) -> (i32, i32) {
    %c0_i32 = arith.constant 0 : i32
    %c0_i32_0 = arith.constant 0 : i32
    %c0_i32_1 = arith.constant 0 : i32
    return %c0_i32, %c0_i32_0 : i32, i32
  }
  func.func @transform_7(%arg0: i32) -> (i32, i32, i32) {
    %c0_i32 = arith.constant 0 : i32
    %c0_i32_0 = arith.constant 0 : i32
    %c0_i32_1 = arith.constant 0 : i32
    %c0_i32_2 = arith.constant 0 : i32
    return %c0_i32, %c0_i32_0, %c0_i32_1 : i32, i32, i32
  }
  func.func @transform_8(%arg0: i32) -> (i32, i32) {
    %c0_i32 = arith.constant 0 : i32
    %c0_i32_0 = arith.constant 0 : i32
    %c0_i32_1 = arith.constant 0 : i32
    return %c0_i32, %c0_i32_0 : i32, i32
  }
  func.func @transform_9(%arg0: i32) -> (i32, i32) {
    %c0_i32 = arith.constant 0 : i32
    %c0_i32_0 = arith.constant 0 : i32
    %c0_i32_1 = arith.constant 0 : i32
    return %c0_i32, %c0_i32_0 : i32, i32
  }
  func.func @transform_10(%arg0: i32) -> (i32, i32, i32) {
    %c0_i32 = arith.constant 0 : i32
    %c0_i32_0 = arith.constant 0 : i32
    %c0_i32_1 = arith.constant 0 : i32
    %c0_i32_2 = arith.constant 0 : i32
    return %c0_i32, %c0_i32_0, %c0_i32_1 : i32, i32, i32
  }
  func.func @transform_11(%arg0: i32) -> (i32, i32) {
    %c0_i32 = arith.constant 0 : i32
    %c0_i32_0 = arith.constant 0 : i32
    %c0_i32_1 = arith.constant 0 : i32
    return %c0_i32, %c0_i32_0 : i32, i32
  }
  func.func @transform_12(%arg0: i32) -> (i32, i32) {
    %c0_i32 = arith.constant 0 : i32
    %c0_i32_0 = arith.constant 0 : i32
    %c0_i32_1 = arith.constant 0 : i32
    return %c0_i32, %c0_i32_0 : i32, i32
  }
  func.func @transform_13(%arg0: i32) -> (i32, i32) {
    %c0_i32 = arith.constant 0 : i32
    %c0_i32_0 = arith.constant 0 : i32
    return %arg0, %c0_i32 : i32, i32
  }
}

</mosaic_0001>

<bundles_post_ra>
// kernel: ae_forward.1
= control target key start
LH: loop header
LB: loop body
LE: loop exit
PB: predicated region body
PF: predicated region fallthrough
CT: control target
= control target key end

     0   :  { %vm50_vm0 = vcmask 261120   ;;  %vm308_vm1 = vcmask 523264   ;;  %s2608_s28 = smov 64   ;;  %vm459_vm2 = vcmask 130048   ;;  %vm1002_vm3 = vcmask 64512   ;;  %s2611_s27 = smov 32   ;;  %s3408_s0 = inlined_call_operand.vmem [shape: f32[32,64], index: 0, kind: input, shape index: {}]   ;;  %s3409_s1 = inlined_call_operand.vmem [shape: f32[3,16,32], index: 1, kind: input, shape index: {}]   ;;  %s3410_s2 = inlined_call_operand.vmem [shape: f32[192,256], index: 2, kind: input, shape index: {}]   ;;  %s3411_s5 = inlined_call_operand.vmem [shape: f32[768,32], index: 5, kind: input, shape index: {}]   ;;  %s3412_s3 = inlined_call_operand.vmem [shape: f32[1,256], index: 3, kind: input, shape index: {}]   ;;  %s3413_s4 = inlined_call_operand.vmem [shape: f32[3,8,16], index: 4, kind: input, shape index: {}]   ;;  %s3414_s7 = inlined_call_operand.vmem [shape: f32[4,16,8], index: 7, kind: input, shape index: {}]   ;;  %s3415_s6 = inlined_call_operand.vmem [shape: f32[1,32], index: 6, kind: input, shape index: {}]   ;;  %s3416_s8 = inlined_call_operand.vmem [shape: f32[128,64], index: 8, kind: input, shape index: {}]   ;;  %s3417_s10 = inlined_call_operand.vmem [shape: f32[4,16,16], index: 10, kind: input, shape index: {}]   ;;  %s3418_s9 = inlined_call_operand.vmem [shape: f32[1,64], index: 9, kind: input, shape index: {}]   ;;  %s3419_s11 = inlined_call_operand.vmem [shape: f32[256,128], index: 11, kind: input, shape index: {}]   ;;  %s3420_s12 = inlined_call_operand.vmem [shape: f32[1,128], index: 12, kind: input, shape index: {}]   ;;  %s3421_s13 = inlined_call_operand.vmem [shape: f32[16,128], index: 13, kind: output, shape index: {}]  }
   0x1   :  { %v44_v0 = vld [vmem:[%s3408_s0] sm:$0xff]  ;;  %v45_v1 = vld [vmem:[%s3408_s0 + $0x8] sm:$0xff]  ;;  %v46_v2 = vld [vmem:[%s3408_s0 + $0x10] sm:$0xff]  ;;  %vm1364_vm4 = vcmask 785408  }
   0x2   :  { %v2315_v3 = vpack.c.bf16 %v45_v1, %v44_v0  ;;  %v47_v4 = vld [vmem:[%s3408_s0 + $0x18] sm:$0xff]  ;;  %v48_v5 = vld [vmem:[%s3409_s1] sm:$0xff]  ;;  %v49_v8 = vld [vmem:[%s3409_s1 + $0x8] sm:$0xff] }
   0x3   :  { %v2319_v6 = vpack.c.bf16 %v47_v4, %v46_v2  ;;  %2207 = vmatprep.mubr.msk.f32.mxu1 %vm50_vm0, %v48_v5  ;;  %v1950_v7 = vld [vmem:[%s3409_s1 + $0x20] sm:$0xff]  ;;  %v1951_v9 = vld [vmem:[%s3409_s1 + $0x28] sm:$0xff]  ;;  %v1946_v10 = vld [vmem:[%s3409_s1 + $0x10] sm:$0xff] }
   0x4   :  { %2316 = vmatprep.subr.bf16.mxu1 %v2315_v3  ;;  %2332 = vmatprep.subr.bf16.mxu0 %v2315_v3  ;;  %v1947_v11 = vld [vmem:[%s3409_s1 + $0x18] sm:$0xff]  ;;  %v312_v12 = vld [vmem:[%s3410_s2 + $0x8] sm:$0xff]  ;;  %v311_v14 = vld [vmem:[%s3410_s2] sm:$0xff] }
   0x5   :  { %2318 = vmatpush3.bf16.msra.mxu1 %v2315_v3  ;;  %2334 = vmatpush3.bf16.msra.mxu0 %v2315_v3  ;;  %v314_v13 = vld [vmem:[%s3410_s2 + $0x18] sm:$0xff]  ;;  %v313_v16 = vld [vmem:[%s3410_s2 + $0x10] sm:$0xff]  ;;  %v316_v17 = vld [vmem:[%s3410_s2 + $0x28] sm:$0xff] }
   0x6   :  { %2320 = vmatprep.subr.bf16.mxu1 %v2319_v6  ;;  %2336 = vmatprep.subr.bf16.mxu0 %v2319_v6  ;;  %v2339_v15 = vpack.c.bf16 %v314_v13, %v312_v12  ;;  %v318_v18 = vld [vmem:[%s3410_s2 + $0x38] sm:$0xff]  ;;  %v2341_v19 = vpack.c.bf16 %v313_v16, %v311_v14  ;;  %v315_v21 = vld [vmem:[%s3410_s2 + $0x20] sm:$0xff]  ;;  %v317_v22 = vld [vmem:[%s3410_s2 + $0x30] sm:$0xff] }
   0x7   :  { %2229 = vmatprep.mubr.msk.f32.mxu0 %vm50_vm0, %v1950_v7  ;;  %v2343_v20 = vpack.c.bf16 %v318_v18, %v316_v17  ;;  %v320_v23 = vld [vmem:[%s3410_s2 + $0x48] sm:$0xff]  ;;  %v322_v24 = vld [vmem:[%s3410_s2 + $0x58] sm:$0xff]  ;;  %v2345_v25 = vpack.c.bf16 %v317_v22, %v315_v21  ;;  %v319_v27 = vld [vmem:[%s3410_s2 + $0x40] sm:$0xff] }
   0x8   :  { %v2347_v26 = vpack.c.bf16 %v322_v24, %v320_v23  ;;  %v321_v28 = vld [vmem:[%s3410_s2 + $0x50] sm:$0xff]  ;;  %v324_v29 = vld [vmem:[%s3410_s2 + $0x68] sm:$0xff]  ;;  %v326_v30 = vld [vmem:[%s3410_s2 + $0x78] sm:$0xff] }
   0x9   :  { %2322 = vmatpush3.bf16.msra.mxu1 %v2319_v6  ;;  %2338 = vmatpush3.bf16.msra.mxu0 %v2319_v6  ;;  %v2349_v31 = vpack.c.bf16 %v321_v28, %v319_v27  ;;  %v2351_v32 = vpack.c.bf16 %v326_v30, %v324_v29  ;;  %v323_v33 = vld [vmem:[%s3410_s2 + $0x60] sm:$0xff]  ;;  %v325_v34 = vld [vmem:[%s3410_s2 + $0x70] sm:$0xff]  ;;  %v328_v35 = vld [vmem:[%s3410_s2 + $0x88] sm:$0xff]  ;;  %v2609_v30 = vmov 0.0  }
   0xa   :  { %2324 = vmatprep.subr.bf16.mxu1 %v2315_v3  ;;  %v330_v36 = vld [vmem:[%s3410_s2 + $0x98] sm:$0xff]  ;;  %v2353_v37 = vpack.c.bf16 %v325_v34, %v323_v33  ;;  %v327_v39 = vld [vmem:[%s3410_s2 + $0x80] sm:$0xff]  ;;  %v329_v40 = vld [vmem:[%s3410_s2 + $0x90] sm:$0xff] }
   0xb   :  { %v2355_v38 = vpack.c.bf16 %v330_v36, %v328_v35  ;;  %v332_v41 = vld [vmem:[%s3410_s2 + $0xa8] sm:$0xff]  ;;  %v334_v42 = vld [vmem:[%s3410_s2 + $0xb8] sm:$0xff]  ;;  %v2357_v43 = vpack.c.bf16 %v329_v40, %v327_v39  ;;  %v331_v45 = vld [vmem:[%s3410_s2 + $0xa0] sm:$0xff] }
   0xc   :  { %2208 = vmatmul.mubr.msk.f32.vlgmr.msra.gmra.mrb[0].mxu1 %vm50_vm0, %v49_v8  ;;  %2230 = vmatmul.mubr.msk.f32.vlgmr.msra.gmra.mrb[0].mxu0 %vm50_vm0, %v1951_v9  ;;  %v2359_v44 = vpack.c.bf16 %v334_v42, %v332_v41  ;;  %v333_v46 = vld [vmem:[%s3410_s2 + $0xb0] sm:$0xff]  ;;  %v336_v47 = vld [vmem:[%s3410_s2 + $0xc8] sm:$0xff]  ;;  %v338_v48 = vld [vmem:[%s3410_s2 + $0xd8] sm:$0xff] }
   0xd   :  { %2326 = vmatpush3.bf16.msra.mxu1 %v2315_v3  ;;  %2218 = vmatprep.mubr.msk.f32.mxu1 %vm50_vm0, %v1946_v10  ;;  %v2361_v49 = vpack.c.bf16 %v333_v46, %v331_v45  ;;  %v2363_v50 = vpack.c.bf16 %v338_v48, %v336_v47  ;;  %v335_v51 = vld [vmem:[%s3410_s2 + $0xc0] sm:$0xff]  ;;  %v337_v52 = vld [vmem:[%s3410_s2 + $0xd0] sm:$0xff]  ;;  %v340_v53 = vld [vmem:[%s3410_s2 + $0xe8] sm:$0xff] }
   0xe   :  { %2328 = vmatprep.subr.bf16.mxu1 %v2319_v6  ;;  %v342_v54 = vld [vmem:[%s3410_s2 + $0xf8] sm:$0xff]  ;;  %v2365_v55 = vpack.c.bf16 %v337_v52, %v335_v51  ;;  %v339_v57 = vld [vmem:[%s3410_s2 + $0xe0] sm:$0xff]  ;;  %v341_v58 = vld [vmem:[%s3410_s2 + $0xf0] sm:$0xff]  ;;  %527 = vmatprep.mubr.f32.mxu0 %v2609_v30 }
   0xf   :  { %v2367_v56 = vpack.c.bf16 %v342_v54, %v340_v53  ;;  %v344_v59 = vld [vmem:[%s3410_s2 + $0x108] sm:$0xff]  ;;  %v346_v60 = vld [vmem:[%s3410_s2 + $0x118] sm:$0xff]  ;;  %v2369_v61 = vpack.c.bf16 %v341_v58, %v339_v57  ;;  %v343_v63 = vld [vmem:[%s3410_s2 + $0x100] sm:$0xff] }
  0x10   :  { %v2371_v62 = vpack.c.bf16 %v346_v60, %v344_v59  ;;  %v345_v0 = vld [vmem:[%s3410_s2 + $0x110] sm:$0xff]  ;;  %v348_v1 = vld [vmem:[%s3410_s2 + $0x128] sm:$0xff]  ;;  %v350_v2 = vld [vmem:[%s3410_s2 + $0x138] sm:$0xff] }
  0x11   :  { %2330 = vmatpush3.bf16.msra.mxu1 %v2319_v6  ;;  %v2373_v3 = vpack.c.bf16 %v345_v0, %v343_v63  ;;  %v2375_v4 = vpack.c.bf16 %v350_v2, %v348_v1  ;;  %v347_v5 = vld [vmem:[%s3410_s2 + $0x120] sm:$0xff]  ;;  %v349_v6 = vld [vmem:[%s3410_s2 + $0x130] sm:$0xff]  ;;  %v352_v7 = vld [vmem:[%s3410_s2 + $0x148] sm:$0xff] }
  0x12   :  { %2340 = vmatprep.subr.bf16.mxu1 %v2339_v15  ;;  %v354_v8 = vld [vmem:[%s3410_s2 + $0x158] sm:$0xff]  ;;  %v2377_v9 = vpack.c.bf16 %v349_v6, %v347_v5  ;;  %v353_v12 = vld [vmem:[%s3410_s2 + $0x150] sm:$0xff]  ;;  %v356_v13 = vld [vmem:[%s3410_s2 + $0x168] sm:$0xff]  ;;  %v361_v6 = vlaneseq }
  0x13   :  { %v2379_v10 = vpack.c.bf16 %v354_v8, %v352_v7  ;;  %v358_v14 = vld [vmem:[%s3410_s2 + $0x178] sm:$0xff]  ;;  %v355_v17 = vld [vmem:[%s3410_s2 + $0x160] sm:$0xff]  ;;  %v357_v18 = vld [vmem:[%s3410_s2 + $0x170] sm:$0xff] }
  0x14   :  { %2219 = vmatmul.mubr.msk.f32.vlgmr.msra.gmra.mrb[2].mxu1 %vm50_vm0, %v1947_v11  ;;  %v351_v11 = vld [vmem:[%s3410_s2 + $0x140] sm:$0xff]  ;;  %v2383_v16 = vpack.c.bf16 %v358_v14, %v356_v13  ;;  %v719_v35 = vld [vmem:[%s3411_s5 + $0x108] sm:$0xff]  ;;  %v720_v39 = vld [vmem:[%s3411_s5 + $0x110] sm:$0xff]  ;;  %v362_v7 = vshrl.u32 %v361_v6, 7 }
  0x15   :  { %2342 = vmatpush1.bf16.msra.mxu1 %v2341_v19  ;;  %v2381_v15 = vpack.c.bf16 %v353_v12, %v351_v11  ;;  %v2385_v19 = vpack.c.bf16 %v357_v18, %v355_v17  ;;  %v718_v33 = vld [vmem:[%s3411_s5 + $0x100] sm:$0xff]  ;;  %v721_v41 = vld [vmem:[%s3411_s5 + $0x118] sm:$0xff]  ;;  %v723_v47 = vld [vmem:[%s3411_s5 + $0x128] sm:$0xff] }
  0x16   :  { %2344 = vmatprep.subr.bf16.mxu1 %v2343_v20  ;;  %v2433_v36 = vpack.c.bf16 %v719_v35, %v718_v33  ;;  %v2437_v42 = vpack.c.bf16 %v721_v41, %v720_v39  ;;  %v722_v45 = vld [vmem:[%s3411_s5 + $0x120] sm:$0xff]  ;;  %v724_v51 = vld [vmem:[%s3411_s5 + $0x130] sm:$0xff]  ;;  %v725_v53 = vld [vmem:[%s3411_s5 + $0x138] sm:$0xff]  ;;  %v363_v8 = vsub.s32 0, %v362_v7 }
  0x17   :  { %v2441_v48 = vpack.c.bf16 %v723_v47, %v722_v45  ;;  %v2445_v54 = vpack.c.bf16 %v725_v53, %v724_v51  ;;  %v726_v57 = vld [vmem:[%s3411_s5 + $0x140] sm:$0xff]  ;;  %v727_v59 = vld [vmem:[%s3411_s5 + $0x148] sm:$0xff]  ;;  %v728_v63 = vld [vmem:[%s3411_s5 + $0x150] sm:$0xff] }
  0x18   :  { %v2449_v60 = vpack.c.bf16 %v727_v59, %v726_v57  ;;  %v729_v1 = vld [vmem:[%s3411_s5 + $0x158] sm:$0xff]  ;;  %v686_v33 = vld [vmem:[%s3411_s5] sm:$0xff]  ;;  %v704_v35 = vld [vmem:[%s3411_s5 + $0x90] sm:$0xff] }
  0x19   :  { %2346 = vmatpush1.bf16.msra.mxu1 %v2345_v25  ;;  %v2453_v2 = vpack.c.bf16 %v729_v1, %v728_v63  ;;  %v689_v41 = vld [vmem:[%s3411_s5 + $0x18] sm:$0xff]  ;;  %v690_v45 = vld [vmem:[%s3411_s5 + $0x20] sm:$0xff]  ;;  %v708_v47 = vld [vmem:[%s3411_s5 + $0xb0] sm:$0xff] }
  0x1a   :  { %2348 = vmatprep.subr.bf16.mxu1 %v2347_v26  ;;  %v692_v51 = vld [vmem:[%s3411_s5 + $0x30] sm:$0xff]  ;;  %v710_v53 = vld [vmem:[%s3411_s5 + $0xc0] sm:$0xff]  ;;  %v699_v6 = vld [vmem:[%s3411_s5 + $0x68] sm:$0xff] }
  0x1b   :  { %v694_v57 = vld [vmem:[%s3411_s5 + $0x40] sm:$0xff]  ;;  %v712_v59 = vld [vmem:[%s3411_s5 + $0xd0] sm:$0xff] }
  0x1c   :  { %v696_v63 = vld [vmem:[%s3411_s5 + $0x50] sm:$0xff]  ;;  %v714_v1 = vld [vmem:[%s3411_s5 + $0xe0] sm:$0xff] }
  0x1d   :  { %2350 = vmatpush1.bf16.msra.mxu1 %v2349_v31  ;;  %v734_v31 = vld [vmem:[%s3411_s5 + $0x180] sm:$0xff] }
  0x1e   :  { %2352 = vmatprep.subr.bf16.mxu1 %v2351_v32  ;;  %v735_v32 = vld [vmem:[%s3411_s5 + $0x188] sm:$0xff] }
  0x1f   :  { %v2431_v34 = vpack.c.bf16 %v735_v32, %v734_v31  ;;  %v1957_v31 = vld [vmem:[%s3413_s4 + $0x8] sm:$0xff] }
  0x21   :  { %2354 = vmatpush1.bf16.msra.mxu1 %v2353_v37  ;;  %v736_v37 = vld [vmem:[%s3411_s5 + $0x190] sm:$0xff] }
  0x22   :  { %2356 = vmatprep.subr.bf16.mxu1 %v2355_v38  ;;  %v737_v38 = vld [vmem:[%s3411_s5 + $0x198] sm:$0xff] }
  0x23   :  { %v2435_v40 = vpack.c.bf16 %v737_v38, %v736_v37  ;;  %v1959_v37 = vld [vmem:[%s3413_s4 + $0x10] sm:$0xff] }
  0x25   :  { %2358 = vmatpush1.bf16.msra.mxu1 %v2357_v43  ;;  %v738_v43 = vld [vmem:[%s3411_s5 + $0x1a0] sm:$0xff] }
  0x26   :  { %2360 = vmatprep.subr.bf16.mxu1 %v2359_v44  ;;  %v739_v44 = vld [vmem:[%s3411_s5 + $0x1a8] sm:$0xff] }
  0x27   :  { %v2439_v46 = vpack.c.bf16 %v739_v44, %v738_v43 }
  0x29   :  { %2362 = vmatpush1.bf16.msra.mxu1 %v2361_v49  ;;  %v740_v49 = vld [vmem:[%s3411_s5 + $0x1b0] sm:$0xff] }
  0x2a   :  { %2364 = vmatprep.subr.bf16.mxu1 %v2363_v50  ;;  %v741_v50 = vld [vmem:[%s3411_s5 + $0x1b8] sm:$0xff] }
  0x2b   :  { %v2443_v52 = vpack.c.bf16 %v741_v50, %v740_v49 }
  0x2d   :  { %2366 = vmatpush1.bf16.msra.mxu1 %v2365_v55  ;;  %v742_v55 = vld [vmem:[%s3411_s5 + $0x1c0] sm:$0xff] }
  0x2e   :  { %2368 = vmatprep.subr.bf16.mxu1 %v2367_v56  ;;  %v743_v56 = vld [vmem:[%s3411_s5 + $0x1c8] sm:$0xff] }
  0x2f   :  { %v2447_v58 = vpack.c.bf16 %v743_v56, %v742_v55 }
  0x31   :  { %2370 = vmatpush1.bf16.msra.mxu1 %v2369_v61  ;;  %v744_v61 = vld [vmem:[%s3411_s5 + $0x1d0] sm:$0xff] }
  0x32   :  { %2372 = vmatprep.subr.bf16.mxu1 %v2371_v62  ;;  %v745_v62 = vld [vmem:[%s3411_s5 + $0x1d8] sm:$0xff] }
  0x33   :  { %v2451_v0 = vpack.c.bf16 %v745_v62, %v744_v61 }
  0x35   :  { %2374 = vmatpush1.bf16.msra.mxu1 %v2373_v3  ;;  %v746_v3 = vld [vmem:[%s3411_s5 + $0x1e0] sm:$0xff] }
  0x36   :  { %2376 = vmatprep.subr.bf16.mxu1 %v2375_v4  ;;  %v747_v4 = vld [vmem:[%s3411_s5 + $0x1e8] sm:$0xff] }
  0x37   :  { %v2455_v5 = vpack.c.bf16 %v747_v4, %v746_v3 }
  0x39   :  { %2378 = vmatpush1.bf16.msra.mxu1 %v2377_v9  ;;  %v359_v9 = vld [vmem:[%s3412_s3] sm:$0x3] }
  0x3a   :  { %2380 = vmatprep.subr.bf16.mxu1 %v2379_v10  ;;  %v367_v10 = vsub.s32 1, %v362_v7  ;;  %v364_v11 = vrot.slane %v359_v9, %v363_v8  ;;  %v716_v7 = vld [vmem:[%s3411_s5 + $0xf0] sm:$0xff]  ;;  %v717_v8 = vld [vmem:[%s3411_s5 + $0xf8] sm:$0xff] }
  0x3c   :  { %v368_v13 = vrot.slane %v359_v9, %v367_v10  ;;  %v2427_v10 = vpack.c.bf16 %v717_v8, %v716_v7  ;;  %v781_v7 = vld [vmem:[%s3411_s5 + $0x2f8] sm:$0xff] }
  0x3d   :  { %2382 = vmatpush1.bf16.msra.mxu1 %v2381_v15 }
  0x3e   :  { %2384 = vmatprep.subr.bf16.mxu1 %v2383_v16 }
  0x41   :  { %2386 = vmatpush1.bf16.msra.mxu1 %v2385_v19 }
  0x42   :  { %2432 = vmatprep.subr.bf16.mxu1 %v2431_v34  ;;  %v687_v34 = vld [vmem:[%s3411_s5 + $0x8] sm:$0xff] }
  0x43   :  { %v2401_v38 = vpack.c.bf16 %v687_v34, %v686_v33 }
  0xdf   :  { %v2209_v20 = vpop.f32.mrb[0].mxu1  ;;  %v2231_v21 = vpop.f32.mrb[0].mxu0 }
  0xe0   :  { %v123_v22 = vpop.f32.mrb[1].mxu1  ;;  %v291_v23 = vpop.f32.mrb[1].mxu0 }
  0xe1   :  { %1954 = vmatprep.mubr.msk.f32.mxu1 %vm308_vm1, %v291_v23 }
  0xe7   :  { %v2220_v24 = vpop.f32.mrb[2].mxu1 }
  0xe8   :  { %v207_v25 = vpop.f32.mrb[3].mxu1 }
  0xe9   :  { %302 = vrot.lane.b32.xlu0 %v207_v25, %s2608_s28 }
  0xed   :  { %304 = vrot.lane.b32.xlu0 %v2220_v24, %s2608_s28 }
 0x15b   :  { %v303_v26 = vpop.permute.xlu0 %302 }
 0x15c   :  { %v309_v27 = vsel %vm308_vm1, %v123_v22, %v303_v26 }
 0x15d   :  { %442 = vmatmul.mubr.f32.vlgmr.msra.gmra.mrb[4].mxu1 %v309_v27  ;;  %v458_v27 = vld [vmem:[%s3413_s4] sm:$0xff] }
 0x15e   :  { %1955 = vmatprep.mubr.msk.f32.mxu1 %vm308_vm1, %v2231_v21  ;;  %2434 = vmatpush3.bf16.msra.mxu1 %v2433_v36  ;;  %v705_v36 = vld [vmem:[%s3411_s5 + $0x98] sm:$0xff] }
 0x15f   :  { %v305_v28 = vpop.permute.xlu0 %304  ;;  %2436 = vmatprep.subr.bf16.mxu1 %v2435_v40  ;;  %v2403_v39 = vpack.c.bf16 %v705_v36, %v704_v35  ;;  %v688_v40 = vld [vmem:[%s3411_s5 + $0x10] sm:$0xff]  ;;  %v753_v36 = vld [vmem:[%s3411_s5 + $0x218] sm:$0xff] }
 0x160   :  { %v310_v29 = vsel %vm308_vm1, %v2209_v20, %v305_v28  ;;  %v702_v28 = vld [vmem:[%s3411_s5 + $0x80] sm:$0xff]  ;;  %v2405_v43 = vpack.c.bf16 %v689_v41, %v688_v40  ;;  %v752_v35 = vld [vmem:[%s3411_s5 + $0x210] sm:$0xff] }
 0x161   :  { %448 = vmatmul.mubr.f32.gmra.mrb[6].mxu1 %v310_v29  ;;  %v703_v29 = vld [vmem:[%s3411_s5 + $0x88] sm:$0xff]  ;;  %v2469_v40 = vpack.c.bf16 %v753_v36, %v752_v35  ;;  %v1367_v36 = vld [vmem:[%s3416_s8] sm:$0xff] }
 0x162   :  { %2438 = vmatpush3.bf16.msra.mxu1 %v2437_v42  ;;  %v2399_v32 = vpack.c.bf16 %v703_v29, %v702_v28  ;;  %v706_v42 = vld [vmem:[%s3411_s5 + $0xa0] sm:$0xff]  ;;  %v768_v28 = vld [vmem:[%s3411_s5 + $0x290] sm:$0xff]  ;;  %v769_v29 = vld [vmem:[%s3411_s5 + $0x298] sm:$0xff] }
 0x163   :  { %2440 = vmatprep.subr.bf16.mxu1 %v2439_v46  ;;  %v691_v46 = vld [vmem:[%s3411_s5 + $0x28] sm:$0xff]  ;;  %v2467_v34 = vpack.c.bf16 %v769_v29, %v768_v28 }
 0x164   :  { %v2409_v49 = vpack.c.bf16 %v691_v46, %v690_v45  ;;  %v773_v45 = vld [vmem:[%s3411_s5 + $0x2b8] sm:$0xff]  ;;  %v1001_v29 = vld [vmem:[%s3414_s7 + $0x8] sm:$0xff] }
 0x165   :  { %v1969_v35 = vld [vmem:[%s3414_s7 + $0x28] sm:$0xff] }
 0x166   :  { %2442 = vmatpush3.bf16.msra.mxu1 %v2441_v48  ;;  %v709_v48 = vld [vmem:[%s3411_s5 + $0xb8] sm:$0xff] }
 0x167   :  { %2444 = vmatprep.subr.bf16.mxu1 %v2443_v52  ;;  %v2411_v50 = vpack.c.bf16 %v709_v48, %v708_v47  ;;  %v693_v52 = vld [vmem:[%s3411_s5 + $0x38] sm:$0xff] }
 0x168   :  { %v2413_v55 = vpack.c.bf16 %v693_v52, %v692_v51  ;;  %v774_v52 = vld [vmem:[%s3411_s5 + $0x2c0] sm:$0xff] }
 0x16a   :  { %2446 = vmatpush3.bf16.msra.mxu1 %v2445_v54  ;;  %v711_v54 = vld [vmem:[%s3411_s5 + $0xc8] sm:$0xff] }
 0x16b   :  { %2448 = vmatprep.subr.bf16.mxu1 %v2447_v58  ;;  %v2415_v56 = vpack.c.bf16 %v711_v54, %v710_v53  ;;  %v695_v58 = vld [vmem:[%s3411_s5 + $0x48] sm:$0xff] }
 0x16c   :  { %v2417_v61 = vpack.c.bf16 %v695_v58, %v694_v57  ;;  %v775_v53 = vld [vmem:[%s3411_s5 + $0x2c8] sm:$0xff]  ;;  %v776_v58 = vld [vmem:[%s3411_s5 + $0x2d0] sm:$0xff] }
 0x16d   :  { %v759_v57 = vld [vmem:[%s3411_s5 + $0x248] sm:$0xff] }
 0x16e   :  { %2450 = vmatpush3.bf16.msra.mxu1 %v2449_v60  ;;  %v713_v60 = vld [vmem:[%s3411_s5 + $0xd8] sm:$0xff] }
 0x16f   :  { %2452 = vmatprep.subr.bf16.mxu1 %v2451_v0  ;;  %v2419_v62 = vpack.c.bf16 %v713_v60, %v712_v59  ;;  %v697_v0 = vld [vmem:[%s3411_s5 + $0x58] sm:$0xff] }
 0x170   :  { %v2421_v3 = vpack.c.bf16 %v697_v0, %v696_v63  ;;  %v777_v59 = vld [vmem:[%s3411_s5 + $0x2d8] sm:$0xff]  ;;  %v778_v0 = vld [vmem:[%s3411_s5 + $0x2e0] sm:$0xff] }
 0x171   :  { %v761_v63 = vld [vmem:[%s3411_s5 + $0x258] sm:$0xff] }
 0x172   :  { %2454 = vmatpush3.bf16.msra.mxu1 %v2453_v2  ;;  %v715_v2 = vld [vmem:[%s3411_s5 + $0xe8] sm:$0xff] }
 0x173   :  { %2456 = vmatprep.subr.bf16.mxu1 %v2455_v5  ;;  %v2423_v4 = vpack.c.bf16 %v715_v2, %v714_v1  ;;  %v698_v5 = vld [vmem:[%s3411_s5 + $0x60] sm:$0xff]  ;;  %v779_v1 = vld [vmem:[%s3411_s5 + $0x2e8] sm:$0xff] }
 0x174   :  { %v2425_v9 = vpack.c.bf16 %v699_v6, %v698_v5  ;;  %v763_v5 = vld [vmem:[%s3411_s5 + $0x268] sm:$0xff]  ;;  %v780_v6 = vld [vmem:[%s3411_s5 + $0x2f0] sm:$0xff] }
 0x230   :  { %v443_v12 = vpop.f32.mrb[4].mxu1 }
 0x231   :  { %v445_v14 = vpop.f32.mrb[5].mxu1  ;;  %v444_v15 = vadd.f32 %v443_v12, %v364_v11  ;;  %v701_v12 = vld [vmem:[%s3411_s5 + $0x78] sm:$0xff] }
 0x232   :  { %v446_v16 = vadd.f32 %v445_v14, %v368_v13  ;;  %v730_v14 = vld [vmem:[%s3411_s5 + $0x160] sm:$0xff] }
 0x233   :  { %v454_v21 = vmax.f32 %v444_v15, 0.0  ;;  %v731_v15 = vld [vmem:[%s3411_s5 + $0x168] sm:$0xff] }
 0x234   :  { %v449_v17 = vpop.f32.mrb[6].mxu1  ;;  %v455_v23 = vmax.f32 %v446_v16, 0.0  ;;  %v2457_v16 = vpack.c.bf16 %v731_v15, %v730_v14  ;;  %v1972_v14 = vld [vmem:[%s3414_s7 + $0x30] sm:$0xff] }
 0x235   :  { %v450_v18 = vadd.f32 %v449_v17, %v364_v11  ;;  %v451_v19 = vpop.f32.mrb[7].mxu1  ;;  %v700_v11 = vld [vmem:[%s3411_s5 + $0x70] sm:$0xff]  ;;  %v766_v17 = vld [vmem:[%s3411_s5 + $0x280] sm:$0xff] }
 0x236   :  { %v452_v20 = vadd.f32 %v451_v19, %v368_v13  ;;  %v2429_v13 = vpack.c.bf16 %v701_v12, %v700_v11  ;;  %2458 = vmatpush3.bf16.msra.mxu1 %v2457_v16  ;;  %v765_v11 = vld [vmem:[%s3411_s5 + $0x278] sm:$0xff] }
 0x237   :  { %v456_v22 = vmax.f32 %v450_v18, 0.0  ;;  %v767_v18 = vld [vmem:[%s3411_s5 + $0x288] sm:$0xff] }
 0x238   :  { %v457_v24 = vmax.f32 %v452_v20, 0.0  ;;  %v2463_v19 = vpack.c.bf16 %v767_v18, %v766_v17  ;;  %v748_v20 = vld [vmem:[%s3411_s5 + $0x1f0] sm:$0xff]  ;;  %v1961_v18 = vld [vmem:[%s3415_s6] ss:$0 sm:$0xff] }
 0x239   :  { %v2389_v25 = vpack.c.bf16 %v456_v22, %v454_v21  ;;  %v749_v21 = vld [vmem:[%s3411_s5 + $0x1f8] sm:$0xff] }
 0x23a   :  { %v2387_v26 = vpack.c.bf16 %v457_v24, %v455_v23  ;;  %v2459_v22 = vpack.c.bf16 %v749_v21, %v748_v20  ;;  %v732_v23 = vld [vmem:[%s3411_s5 + $0x170] sm:$0xff]  ;;  %v733_v24 = vld [vmem:[%s3411_s5 + $0x178] sm:$0xff] }
 0x23c   :  { %2388 = vmatprep.subr.bf16.mxu0 %v2387_v26  ;;  %2460 = vmatprep.subr.bf16.mxu1 %v2459_v22 }
 0x23d   :  { %2390 = vmatpush1.bf16.msra.mxu0 %v2389_v25 }
 0x23e   :  { %2392 = vmatprep.subr.bf16.mxu0 %v2387_v26 }
 0x240   :  { %1956 = vmatmul.mubr.msk.f32.vlgmr.msra.gmra.mrb[2].mxu0 %vm459_vm2, %v458_v27  ;;  %v751_v27 = vld [vmem:[%s3411_s5 + $0x208] sm:$0xff] }
 0x241   :  { %2394 = vmatpush1.bf16.msra.mxu0 %v2389_v25  ;;  %603 = vmatprep.mubr.f32.mxu0 %v2609_v30 }
 0x242   :  { %2396 = vmatprep.subr.bf16.mxu0 %v2387_v26  ;;  %v750_v26 = vld [vmem:[%s3411_s5 + $0x200] sm:$0xff] }
 0x244   :  { %1958 = vmatmul.mubr.msk.f32.vlgmr.msra.gmra.mrb[4].mxu0 %vm459_vm2, %v1957_v31 }
 0x245   :  { %2398 = vmatpush1.bf16.msra.mxu0 %v2389_v25  ;;  %679 = vmatprep.mubr.f32.mxu0 %v2609_v30  ;;  %v707_v30 = vld [vmem:[%s3411_s5 + $0xa8] sm:$0xff]  ;;  %v2461_v25 = vpack.c.bf16 %v733_v24, %v732_v23 }
 0x246   :  { %2400 = vmatprep.subr.bf16.mxu0 %v2399_v32  ;;  %v2407_v44 = vpack.c.bf16 %v707_v30, %v706_v42  ;;  %v2465_v32 = vpack.c.bf16 %v751_v27, %v750_v26  ;;  %v754_v30 = vld [vmem:[%s3411_s5 + $0x220] sm:$0xff] }
 0x247   :  { %2462 = vmatpush3.bf16.msra.mxu1 %v2461_v25 }
 0x248   :  { %1960 = vmatmul.mubr.msk.f32.vlgmr.msra.gmra.mrb[6].mxu0 %vm459_vm2, %v1959_v37  ;;  %v770_v37 = vld [vmem:[%s3411_s5 + $0x2a0] sm:$0xff] }
 0x249   :  { %2402 = vmatpush3.bf16.msra.mxu0 %v2401_v38  ;;  %v771_v38 = vld [vmem:[%s3411_s5 + $0x2a8] sm:$0xff] }
 0x24a   :  { %2404 = vmatprep.subr.bf16.mxu0 %v2403_v39  ;;  %v2471_v42 = vpack.c.bf16 %v771_v38, %v770_v37  ;;  %v1368_v37 = vld [vmem:[%s3416_s8 + $0x8] sm:$0xff]  ;;  %v1369_v38 = vld [vmem:[%s3416_s8 + $0x10] sm:$0xff] }
 0x24d   :  { %2406 = vmatpush3.bf16.msra.mxu0 %v2405_v43  ;;  %v755_v43 = vld [vmem:[%s3411_s5 + $0x228] sm:$0xff] }
 0x24e   :  { %2408 = vmatprep.subr.bf16.mxu0 %v2407_v44  ;;  %v772_v44 = vld [vmem:[%s3411_s5 + $0x2b0] sm:$0xff]  ;;  %v2473_v46 = vpack.c.bf16 %v755_v43, %v754_v30  ;;  %v1372_v30 = vld [vmem:[%s3416_s8 + $0x28] sm:$0xff] }
 0x24f   :  { %v2475_v48 = vpack.c.bf16 %v773_v45, %v772_v44  ;;  %v1373_v44 = vld [vmem:[%s3416_s8 + $0x30] sm:$0xff]  ;;  %v1374_v45 = vld [vmem:[%s3416_s8 + $0x38] sm:$0xff] }
 0x251   :  { %2410 = vmatpush3.bf16.msra.mxu0 %v2409_v49  ;;  %v756_v49 = vld [vmem:[%s3411_s5 + $0x230] sm:$0xff] }
 0x252   :  { %2412 = vmatprep.subr.bf16.mxu0 %v2411_v50  ;;  %v757_v50 = vld [vmem:[%s3411_s5 + $0x238] sm:$0xff] }
 0x253   :  { %v2477_v54 = vpack.c.bf16 %v757_v50, %v756_v49  ;;  %v1377_v50 = vld [vmem:[%s3416_s8 + $0x50] sm:$0xff] }
 0x255   :  { %2414 = vmatpush3.bf16.msra.mxu0 %v2413_v55  ;;  %v2479_v55 = vpack.c.bf16 %v775_v53, %v774_v52  ;;  %v1379_v53 = vld [vmem:[%s3416_s8 + $0x60] sm:$0xff] }
 0x256   :  { %2416 = vmatprep.subr.bf16.mxu0 %v2415_v56  ;;  %v758_v56 = vld [vmem:[%s3411_s5 + $0x240] sm:$0xff] }
 0x257   :  { %v2481_v60 = vpack.c.bf16 %v759_v57, %v758_v56  ;;  %v1381_v56 = vld [vmem:[%s3416_s8 + $0x70] sm:$0xff]  ;;  %v1382_v57 = vld [vmem:[%s3416_s8 + $0x78] sm:$0xff] }
 0x259   :  { %2418 = vmatpush3.bf16.msra.mxu0 %v2417_v61  ;;  %v2483_v61 = vpack.c.bf16 %v777_v59, %v776_v58  ;;  %v2523_v58 = vpack.c.bf16 %v1382_v57, %v1381_v56 }
 0x25a   :  { %2420 = vmatprep.subr.bf16.mxu0 %v2419_v62  ;;  %v760_v62 = vld [vmem:[%s3411_s5 + $0x250] sm:$0xff] }
 0x25b   :  { %v2485_v2 = vpack.c.bf16 %v761_v63, %v760_v62 }
 0x25d   :  { %2422 = vmatpush3.bf16.msra.mxu0 %v2421_v3  ;;  %v2487_v3 = vpack.c.bf16 %v779_v1, %v778_v0 }
 0x25e   :  { %2424 = vmatprep.subr.bf16.mxu0 %v2423_v4  ;;  %v762_v4 = vld [vmem:[%s3411_s5 + $0x260] sm:$0xff] }
 0x25f   :  { %v2489_v8 = vpack.c.bf16 %v763_v5, %v762_v4 }
 0x261   :  { %2426 = vmatpush3.bf16.msra.mxu0 %v2425_v9  ;;  %v2491_v9 = vpack.c.bf16 %v781_v7, %v780_v6 }
 0x262   :  { %2428 = vmatprep.subr.bf16.mxu0 %v2427_v10  ;;  %v764_v10 = vld [vmem:[%s3411_s5 + $0x270] sm:$0xff] }
 0x263   :  { %v2493_v12 = vpack.c.bf16 %v765_v11, %v764_v10 }
 0x265   :  { %2430 = vmatpush3.bf16.msra.mxu0 %v2429_v13  ;;  %v1000_v13 = vld [vmem:[%s3414_s7] sm:$0xff] }
 0x266   :  { %2464 = vmatprep.subr.bf16.mxu0 %v2463_v19 }
 0x313   :  { %v529_v31 = vpop.f32.mrb[2].mxu0 }
 0x314   :  { %v531_v33 = vpop.f32.mrb[3].mxu0 }
 0x315   :  { %853 = vmatprep.mubr.f32.mxu0 %v531_v33  ;;  %v1965_v33 = vld [vmem:[%s3414_s7 + $0x18] sm:$0xff] }
 0x316   :  { %854 = vmatmul.mubr.f32.vlgmr.msra.gmra.mrb[8].mxu0 %v529_v31  ;;  %v1964_v31 = vld [vmem:[%s3414_s7 + $0x10] sm:$0xff] }
 0x317   :  { %2466 = vmatpush3.bf16.msra.mxu0 %v2465_v32  ;;  %v605_v39 = vpop.f32.mrb[4].mxu0  ;;  %v1973_v32 = vld [vmem:[%s3414_s7 + $0x38] sm:$0xff] }
 0x318   :  { %v607_v41 = vpop.f32.mrb[5].mxu0  ;;  %2468 = vmatprep.subr.bf16.mxu0 %v2467_v34  ;;  %v1968_v34 = vld [vmem:[%s3414_s7 + $0x20] sm:$0xff]  ;;  %s2610_s7 = smov 96  }
 0x319   :  { %923 = vmatprep.mubr.f32.mxu1 %v607_v41 }
 0x31a   :  { %924 = vmatmul.mubr.f32.vlgmr.msra.gmra.mrb[8].mxu1 %v605_v39  ;;  %v2495_v39 = vpack.c.bf16 %v1368_v37, %v1367_v36  ;;  %v1987_v36 = vld [vmem:[%s3417_s10 + $0x30] sm:$0xff]  ;;  %v1988_v37 = vld [vmem:[%s3417_s10 + $0x38] sm:$0xff] }
 0x31b   :  { %2470 = vmatpush3.bf16.msra.mxu0 %v2469_v40  ;;  %v681_v47 = vpop.f32.mrb[6].mxu0  ;;  %2234 = vmatprep.mubr.msk.f32.mxu1 %vm1002_vm3, %v1000_v13  ;;  %v1370_v40 = vld [vmem:[%s3416_s8 + $0x18] sm:$0xff] }
 0x31c   :  { %2472 = vmatprep.subr.bf16.mxu0 %v2471_v42  ;;  %v683_v51 = vpop.f32.mrb[7].mxu0  ;;  %v2499_v41 = vpack.c.bf16 %v1370_v40, %v1369_v38  ;;  %v1371_v42 = vld [vmem:[%s3416_s8 + $0x20] sm:$0xff] }
 0x31d   :  { %993 = vmatprep.mubr.f32.mxu0 %v683_v51  ;;  %v2503_v43 = vpack.c.bf16 %v1372_v30, %v1371_v42  ;;  %v1378_v51 = vld [vmem:[%s3416_s8 + $0x58] sm:$0xff]  ;;  %v1838_v38 = vld [vmem:[%s3419_s11 + $0x80] sm:$0xff]  ;;  %v1823_v42 = vld [vmem:[%s3419_s11 + $0x8] sm:$0xff] }
 0x31e   :  { %v2515_v52 = vpack.c.bf16 %v1378_v51, %v1377_v50  ;;  %v1822_v40 = vld [vmem:[%s3419_s11] sm:$0xff]  ;;  %v1840_v30 = vld [vmem:[%s3419_s11 + $0x90] sm:$0xff] }
 0x31f   :  { %2474 = vmatpush3.bf16.msra.mxu0 %v2473_v46  ;;  %v2507_v46 = vpack.c.bf16 %v1374_v45, %v1373_v44  ;;  %v2545_v44 = vpack.c.bf16 %v1823_v42, %v1822_v40 }
 0x320   :  { %2476 = vmatprep.subr.bf16.mxu0 %v2475_v48  ;;  %v1376_v48 = vld [vmem:[%s3416_s8 + $0x48] sm:$0xff] }
 0x323   :  { %2478 = vmatpush3.bf16.msra.mxu0 %v2477_v54  ;;  %v1380_v54 = vld [vmem:[%s3416_s8 + $0x68] sm:$0xff] }
 0x324   :  { %2480 = vmatprep.subr.bf16.mxu0 %v2479_v55  ;;  %v2519_v55 = vpack.c.bf16 %v1380_v54, %v1379_v53  ;;  %v1827_v53 = vld [vmem:[%s3419_s11 + $0x28] sm:$0xff]  ;;  %v1844_v54 = vld [vmem:[%s3419_s11 + $0xb0] sm:$0xff] }
 0x327   :  { %2482 = vmatpush3.bf16.msra.mxu0 %v2481_v60 }
 0x328   :  { %2484 = vmatprep.subr.bf16.mxu0 %v2483_v61 }
 0x32b   :  { %2486 = vmatpush3.bf16.msra.mxu0 %v2485_v2 }
 0x32c   :  { %2488 = vmatprep.subr.bf16.mxu0 %v2487_v3 }
 0x32f   :  { %2490 = vmatpush3.bf16.msra.mxu0 %v2489_v8 }
 0x330   :  { %2492 = vmatprep.subr.bf16.mxu0 %v2491_v9 }
 0x333   :  { %2494 = vmatpush3.bf16.msra.mxu0 %v2493_v12 }
 0x336   :  { %994 = vmatmul.mubr.f32.vlgmr.msra.gmra.mrb[10].mxu0 %v681_v47  ;;  %v1375_v47 = vld [vmem:[%s3416_s8 + $0x40] sm:$0xff] }
 0x337   :  { %2249 = vmatprep.mubr.msk.f32.mxu0 %vm1002_vm3, %v1972_v14  ;;  %v2511_v49 = vpack.c.bf16 %v1376_v48, %v1375_v47  ;;  %v1825_v47 = vld [vmem:[%s3419_s11 + $0x18] sm:$0xff]  ;;  %v1842_v48 = vld [vmem:[%s3419_s11 + $0xa0] sm:$0xff] }
 0x3e9   :  { %v2042_v15 = vpop.f32.mrb[8].mxu0 }
 0x3ea   :  { %v2043_v16 = vpop.f32.mrb[9].mxu0 }
 0x3eb   :  { %v2044_v17 = vadd.f32 %v2043_v16, %v2042_v15 }
 0x3ed   :  { %v2077_v19 = vpop.f32.mrb[8].mxu1  ;;  %v856_v21 = vadd.f32 %v2044_v17, %v1961_v18 }
 0x3ee   :  { %v2078_v20 = vpop.f32.mrb[9].mxu1 }
 0x3ef   :  { %v2079_v22 = vadd.f32 %v2078_v20, %v2077_v19 }
 0x3f1   :  { %v926_v23 = vadd.f32 %v2079_v22, %v856_v21  ;;  %v1467_v21 = vld [vmem:[%s3417_s10] sm:$0xff] }
 0x3f2   :  { %v1976_v22 = vld [vmem:[%s3418_s9] ss:$0 sm:$0xff] }
 0x409   :  { %v2112_v24 = vpop.f32.mrb[10].mxu0 }
 0x40a   :  { %v2113_v25 = vpop.f32.mrb[11].mxu0 }
 0x40b   :  { %v2114_v26 = vadd.f32 %v2113_v25, %v2112_v24 }
 0x40d   :  { %v996_v27 = vadd.f32 %v2114_v26, %v926_v23 }
 0x40f   :  { %v999_v28 = vmax.f32 %v996_v27, 0.0 }
 0x411   :  { %2232 = vmatprep.subr.mxu1 %v999_v28  ;;  %2247 = vmatprep.subr.mxu0 %v999_v28 }
 0x412   :  { %2233 = vmatpush3.msra.mxu1 %v999_v28  ;;  %2248 = vmatpush3.msra.mxu0 %v999_v28 }
 0x413   :  { %2235 = vmatmul.mubr.msk.f32.vlgmr.msra.gmra.mrb[10].mxu1 %vm1002_vm3, %v1001_v29  ;;  %2237 = vmatprep.subr.mxu1 %v999_v28 }
 0x414   :  { %2238 = vmatpush3.msra.mxu1 %v999_v28  ;;  %2239 = vmatprep.mubr.msk.f32.mxu1 %vm1002_vm3, %v1964_v31  ;;  %v1468_v31 = vld [vmem:[%s3417_s10 + $0x8] sm:$0xff] }
 0x415   :  { %2242 = vmatprep.subr.mxu1 %v999_v28  ;;  %2250 = vmatmul.mubr.msk.f32.vlgmr.msra.gmra.mrb[12].mxu0 %vm1002_vm3, %v1973_v32  ;;  %v1979_v32 = vld [vmem:[%s3417_s10 + $0x10] sm:$0xff] }
 0x416   :  { %2291 = vmatprep.mubr.msk.f32.mxu0 %vm459_vm2, %v1467_v21  ;;  %v1837_v21 = vld [vmem:[%s3419_s11 + $0x78] sm:$0xff] }
 0x417   :  { %2240 = vmatmul.mubr.msk.f32.vlgmr.msra.gmra.mrb[12].mxu1 %vm1002_vm3, %v1965_v33  ;;  %v1980_v33 = vld [vmem:[%s3417_s10 + $0x18] sm:$0xff] }
 0x418   :  { %2243 = vmatpush3.msra.mxu1 %v999_v28  ;;  %2244 = vmatprep.mubr.msk.f32.mxu1 %vm1002_vm3, %v1968_v34  ;;  %v1983_v34 = vld [vmem:[%s3417_s10 + $0x20] sm:$0xff] }
 0x419   :  { %2496 = vmatprep.subr.bf16.mxu1 %v2495_v39 }
 0x41b   :  { %2245 = vmatmul.mubr.msk.f32.vlgmr.msra.gmra.mrb[14].mxu1 %vm1002_vm3, %v1969_v35  ;;  %v1984_v35 = vld [vmem:[%s3417_s10 + $0x28] sm:$0xff] }
 0x41c   :  { %2498 = vmatpush3.bf16.msra.mxu1 %v2495_v39  ;;  %v1839_v39 = vld [vmem:[%s3419_s11 + $0x88] sm:$0xff] }
 0x41d   :  { %2500 = vmatprep.subr.bf16.mxu1 %v2499_v41 }
 0x420   :  { %2502 = vmatpush3.bf16.msra.mxu1 %v2499_v41  ;;  %v2543_v41 = vpack.c.bf16 %v1839_v39, %v1838_v38 }
 0x421   :  { %2504 = vmatprep.subr.bf16.mxu1 %v2503_v43 }
 0x424   :  { %2506 = vmatpush3.bf16.msra.mxu1 %v2503_v43  ;;  %v1841_v43 = vld [vmem:[%s3419_s11 + $0x98] sm:$0xff] }
 0x425   :  { %2508 = vmatprep.subr.bf16.mxu1 %v2507_v46  ;;  %v2547_v45 = vpack.c.bf16 %v1841_v43, %v1840_v30  ;;  %v1991_v30 = vld [vmem:[%s3420_s12] ss:$0 sm:$0xff] }
 0x428   :  { %2510 = vmatpush3.bf16.msra.mxu1 %v2507_v46  ;;  %v1824_v46 = vld [vmem:[%s3419_s11 + $0x10] sm:$0xff] }
 0x429   :  { %2512 = vmatprep.subr.bf16.mxu1 %v2511_v49  ;;  %v2549_v50 = vpack.c.bf16 %v1825_v47, %v1824_v46 }
 0x42c   :  { %2514 = vmatpush3.bf16.msra.mxu1 %v2511_v49  ;;  %v1843_v49 = vld [vmem:[%s3419_s11 + $0xa8] sm:$0xff] }
 0x42d   :  { %2516 = vmatprep.subr.bf16.mxu1 %v2515_v52  ;;  %v2551_v51 = vpack.c.bf16 %v1843_v49, %v1842_v48 }
 0x430   :  { %2518 = vmatpush3.bf16.msra.mxu1 %v2515_v52  ;;  %v1826_v52 = vld [vmem:[%s3419_s11 + $0x20] sm:$0xff] }
 0x431   :  { %2520 = vmatprep.subr.bf16.mxu1 %v2519_v55  ;;  %v2553_v56 = vpack.c.bf16 %v1827_v53, %v1826_v52 }
 0x434   :  { %2522 = vmatpush3.bf16.msra.mxu1 %v2519_v55  ;;  %v1845_v55 = vld [vmem:[%s3419_s11 + $0xb8] sm:$0xff] }
 0x435   :  { %2524 = vmatprep.subr.bf16.mxu1 %v2523_v58  ;;  %v2555_v57 = vpack.c.bf16 %v1845_v55, %v1844_v54 }
 0x438   :  { %2526 = vmatpush3.bf16.msra.mxu1 %v2523_v58  ;;  %v1828_v58 = vld [vmem:[%s3419_s11 + $0x30] sm:$0xff] }
 0x4e6   :  { %v2236_v59 = vpop.f32.mrb[10].mxu1 }
 0x4e7   :  { %v1075_v60 = vpop.f32.mrb[11].mxu1 }
 0x4e8   :  { %v2251_v61 = vpop.f32.mrb[12].mxu0 }
 0x4e9   :  { %v1327_v62 = vpop.f32.mrb[13].mxu0 }
 0x4ea   :  { %v2241_v63 = vpop.f32.mrb[12].mxu1  ;;  %v2589_v0 = vpack.i.bf16 %v2251_v61, %v1327_v62  ;;  %v1847_v61 = vld [vmem:[%s3419_s11 + $0xc8] sm:$0xff] }
 0x4eb   :  { %v1159_v1 = vpop.f32.mrb[13].mxu1 }
 0x4ec   :  { %v2579_v2 = vpack.i.bf16 %v2241_v63, %v1159_v1  ;;  %2590 = vrot.lane.b32.xlu0 %v2589_v0, %s2610_s7  ;;  %v1830_v0 = vld [vmem:[%s3419_s11 + $0x40] sm:$0xff]  ;;  %v1831_v1 = vld [vmem:[%s3419_s11 + $0x48] sm:$0xff] }
 0x4ee   :  { %2580 = vrot.lane.b32.xlu1 %v2579_v2, %s2611_s27  ;;  %v2246_v3 = vpop.f32.mrb[14].mxu1  ;;  %v1848_v2 = vld [vmem:[%s3419_s11 + $0xd0] sm:$0xff] }
 0x4ef   :  { %v1243_v4 = vpop.f32.mrb[15].mxu1 }
 0x4f0   :  { %v2584_v5 = vpack.i.bf16 %v2246_v3, %v1243_v4  ;;  %v1849_v3 = vld [vmem:[%s3419_s11 + $0xd8] sm:$0xff]  ;;  %v2561_v4 = vpack.c.bf16 %v1831_v1, %v1830_v0 }
 0x4f2   :  { %2585 = vrot.lane.b32.xlu1 %v2584_v5, %s2608_s28  ;;  %v2563_v5 = vpack.c.bf16 %v1849_v3, %v1848_v2 }
 0x55e   :  { %v2591_v7 = vpop.permute.xlu0 %2590 }
 0x55f   :  { %v2593_v11 = vunpack.i.h.bf16 %v2591_v7  ;;  %v2592_v12 = vunpack.i.l.bf16 %v2591_v7  ;;  %v1833_v7 = vld [vmem:[%s3419_s11 + $0x58] sm:$0xff] }
 0x560   :  { %v2581_v6 = vpop.permute.xlu1 %2580 }
 0x561   :  { %v2583_v8 = vunpack.i.h.bf16 %v2581_v6  ;;  %v2582_v9 = vunpack.i.l.bf16 %v2581_v6  ;;  %v1832_v6 = vld [vmem:[%s3419_s11 + $0x50] sm:$0xff] }
 0x563   :  { %v1361_v15 = vsel %vm50_vm0, %v2236_v59, %v2583_v8  ;;  %v1360_v16 = vsel %vm50_vm0, %v1075_v60, %v2582_v9  ;;  %v1829_v59 = vld [vmem:[%s3419_s11 + $0x38] sm:$0xff]  ;;  %v1846_v60 = vld [vmem:[%s3419_s11 + $0xc0] sm:$0xff]  ;;  %v1851_v9 = vld [vmem:[%s3419_s11 + $0xe8] sm:$0xff] }
 0x564   :  { %v2586_v10 = vpop.permute.xlu1 %2585  ;;  %v2557_v62 = vpack.c.bf16 %v1829_v59, %v1828_v58  ;;  %v2559_v63 = vpack.c.bf16 %v1847_v61, %v1846_v60  ;;  %v1850_v8 = vld [vmem:[%s3419_s11 + $0xe0] sm:$0xff] }
 0x565   :  { %v2588_v13 = vunpack.i.h.bf16 %v2586_v10  ;;  %v2587_v14 = vunpack.i.l.bf16 %v2586_v10  ;;  %v2565_v10 = vpack.c.bf16 %v1833_v7, %v1832_v6 }
 0x567   :  { %v1362_v17 = vsel %vm308_vm1, %v1360_v16, %v2587_v14  ;;  %v1363_v18 = vsel %vm308_vm1, %v1361_v15, %v2588_v13  ;;  %v1835_v13 = vld [vmem:[%s3419_s11 + $0x68] sm:$0xff] }
 0x568   :  { %v1365_v19 = vsel %vm1364_vm4, %v1362_v17, %v2592_v12  ;;  %v1366_v20 = vsel %vm1364_vm4, %v1363_v18, %v2593_v11  ;;  %v2567_v11 = vpack.c.bf16 %v1851_v9, %v1850_v8  ;;  %v1834_v12 = vld [vmem:[%s3419_s11 + $0x60] sm:$0xff]  ;;  %v1852_v17 = vld [vmem:[%s3419_s11 + $0xf0] sm:$0xff]  ;;  %v1853_v18 = vld [vmem:[%s3419_s11 + $0xf8] sm:$0xff] }
 0x569   :  { %2284 = vmatprep.mubr.f32.mxu1 %v1365_v19  ;;  %v2569_v14 = vpack.c.bf16 %v1835_v13, %v1834_v12  ;;  %v2571_v19 = vpack.c.bf16 %v1853_v18, %v1852_v17 }
 0x56a   :  { %2285 = vmatmul.mubr.f32.vlgmr.msra.gmra.mrb[16].mxu1 %v1366_v20  ;;  %v1836_v20 = vld [vmem:[%s3419_s11 + $0x70] sm:$0xff] }
 0x63d   :  { %v2286_v23 = vpop.f32.mrb[16].mxu1 }
 0x63e   :  { %v1462_v24 = vadd.f32 %v2286_v23, %v1976_v22  ;;  %v1456_v25 = vpop.f32.mrb[17].mxu1 }
 0x63f   :  { %v1457_v26 = vadd.f32 %v1976_v22, %v1456_v25  ;;  %v2573_v22 = vpack.c.bf16 %v1837_v21, %v1836_v20 }
 0x640   :  { %v1466_v27 = vmax.f32 %v1462_v24, 0.0 }
 0x641   :  { %v1465_v28 = vmax.f32 %v1457_v26, 0.0 }
 0x643   :  { %v2527_v29 = vpack.c.bf16 %v1466_v27, %v1465_v28 }
 0x645   :  { %2528 = vmatprep.subr.bf16.mxu0 %v2527_v29 }
 0x646   :  { %2530 = vmatpush3.bf16.msra.mxu0 %v2527_v29 }
 0x647   :  { %2532 = vmatprep.subr.bf16.mxu0 %v2527_v29 }
 0x649   :  { %2292 = vmatmul.mubr.msk.f32.vlgmr.msra.gmra.mrb[14].mxu0 %vm459_vm2, %v1468_v31 }
 0x64a   :  { %2534 = vmatpush3.bf16.msra.mxu0 %v2527_v29  ;;  %2298 = vmatprep.mubr.msk.f32.mxu0 %vm459_vm2, %v1979_v32 }
 0x64b   :  { %2536 = vmatprep.subr.bf16.mxu0 %v2527_v29 }
 0x64d   :  { %2299 = vmatmul.mubr.msk.f32.vlgmr.msra.gmra.mrb[16].mxu0 %vm459_vm2, %v1980_v33 }
 0x64e   :  { %2538 = vmatpush3.bf16.msra.mxu0 %v2527_v29  ;;  %2305 = vmatprep.mubr.msk.f32.mxu0 %vm459_vm2, %v1983_v34 }
 0x64f   :  { %2540 = vmatprep.subr.bf16.mxu0 %v2527_v29 }
 0x651   :  { %2306 = vmatmul.mubr.msk.f32.vlgmr.msra.gmra.mrb[18].mxu0 %vm459_vm2, %v1984_v35 }
 0x652   :  { %2542 = vmatpush3.bf16.msra.mxu0 %v2527_v29  ;;  %2312 = vmatprep.mubr.msk.f32.mxu0 %vm459_vm2, %v1987_v36 }
 0x653   :  { %2544 = vmatprep.subr.bf16.mxu0 %v2543_v41 }
 0x655   :  { %2313 = vmatmul.mubr.msk.f32.vlgmr.msra.gmra.mrb[20].mxu0 %vm459_vm2, %v1988_v37 }
 0x656   :  { %2546 = vmatpush3.bf16.msra.mxu0 %v2545_v44 }
 0x657   :  { %2548 = vmatprep.subr.bf16.mxu0 %v2547_v45 }
 0x65a   :  { %2550 = vmatpush3.bf16.msra.mxu0 %v2549_v50 }
 0x65b   :  { %2552 = vmatprep.subr.bf16.mxu0 %v2551_v51 }
 0x65e   :  { %2554 = vmatpush3.bf16.msra.mxu0 %v2553_v56 }
 0x65f   :  { %2556 = vmatprep.subr.bf16.mxu0 %v2555_v57 }
 0x662   :  { %2558 = vmatpush3.bf16.msra.mxu0 %v2557_v62 }
 0x663   :  { %2560 = vmatprep.subr.bf16.mxu0 %v2559_v63 }
 0x666   :  { %2562 = vmatpush3.bf16.msra.mxu0 %v2561_v4 }
 0x667   :  { %2564 = vmatprep.subr.bf16.mxu0 %v2563_v5 }
 0x66a   :  { %2566 = vmatpush3.bf16.msra.mxu0 %v2565_v10 }
 0x66b   :  { %2568 = vmatprep.subr.bf16.mxu0 %v2567_v11 }
 0x66e   :  { %2570 = vmatpush3.bf16.msra.mxu0 %v2569_v14 }
 0x66f   :  { %2572 = vmatprep.subr.bf16.mxu0 %v2571_v19 }
 0x672   :  { %2574 = vmatpush3.bf16.msra.mxu0 %v2573_v22 }
 0x71c   :  { %v2293_v15 = vpop.f32.mrb[14].mxu0 }
 0x71d   :  { %v1541_v16 = vpop.f32.mrb[15].mxu0 }
 0x720   :  { %v2300_v23 = vpop.f32.mrb[16].mxu0 }
 0x721   :  { %v1625_v24 = vpop.f32.mrb[17].mxu0 }
 0x724   :  { %v2307_v25 = vpop.f32.mrb[18].mxu0 }
 0x725   :  { %v1709_v26 = vpop.f32.mrb[19].mxu0 }
 0x728   :  { %v2314_v27 = vpop.f32.mrb[20].mxu0 }
 0x729   :  { %v2599_v28 = vpack.i.bf16 %v2300_v23, %v2314_v27  ;;  %v1793_v29 = vpop.f32.mrb[21].mxu0 }
 0x72a   :  { %v2594_v31 = vpack.i.bf16 %v1625_v24, %v1793_v29 }
 0x72b   :  { %2600 = vrot.lane.b32.xlu0 %v2599_v28, %s2608_s28 }
 0x72c   :  { %2595 = vrot.lane.b32.xlu1 %v2594_v31, %s2608_s28 }
 0x79d   :  { %v2601_v32 = vpop.permute.xlu0 %2600 }
 0x79e   :  { %v2596_v33 = vpop.permute.xlu1 %2595  ;;  %v2602_v34 = vunpack.i.l.bf16 %v2601_v32  ;;  %v2603_v39 = vunpack.i.h.bf16 %v2601_v32 }
 0x79f   :  { %v2598_v35 = vunpack.i.h.bf16 %v2596_v33  ;;  %v2597_v36 = vunpack.i.l.bf16 %v2596_v33 }
 0x7a0   :  { %v1821_v40 = vsel %vm308_vm1, %v2307_v25, %v2602_v34  ;;  %v1819_v41 = vsel %vm308_vm1, %v2293_v15, %v2603_v39 }
 0x7a1   :  { %v1820_v37 = vsel %vm308_vm1, %v1709_v26, %v2597_v36  ;;  %v1818_v38 = vsel %vm308_vm1, %v1541_v16, %v2598_v35 }
 0x7a2   :  { %1925 = vmatprep.mubr.f32.mxu0 %v1820_v37 }
 0x7a3   :  { %1926 = vmatmul.mubr.f32.vlgmr.msra.gmra.mrb[22].mxu0 %v1818_v38 }
 0x7a4   :  { %1930 = vmatprep.mubr.f32.mxu0 %v1821_v40 }
 0x7a7   :  { %1931 = vmatmul.mubr.f32.gmra.mrb[24].mxu0 %v1819_v41 }
 0x876   :  { %v2193_v42 = vpop.f32.mrb[22].mxu0 }
 0x877   :  { %v2194_v43 = vpop.f32.mrb[23].mxu0 }
 0x878   :  { %v2195_v44 = vadd.f32 %v2194_v43, %v2193_v42 }
 0x87a   :  { %v1928_v45 = vadd.f32 %v2195_v44, %v1991_v30  ;;  %v2196_v46 = vpop.f32.mrb[24].mxu0 }
 0x87b   :  { %v2197_v47 = vpop.f32.mrb[25].mxu0 }
 0x87c   :  { %2604 = vtanh.f32 %v1928_v45  ;;  %v2198_v48 = vadd.f32 %v2197_v47, %v2196_v46 }
 0x87e   :  { %v1933_v49 = vadd.f32 %v2198_v48, %v1991_v30 }
 0x880   :  { %2606 = vtanh.f32 %v1933_v49 }
 0x886   :  { %v2605_v50 = vpop.eup %2604 }
 0x887   :  { %1938 = vst [vmem:[%s3421_s13] sm:$0xff] %v2605_v50 }
 0x88a   :  { %v2607_v51 = vpop.eup %2606 }
 0x88b   :  { %1939 = vst [vmem:[%s3421_s13 + $0x8] sm:$0xff] %v2607_v51 }

</bundles_post_ra>
